<compile_context>
chip_gen: v7x
topology: tpu7x:2x2x1
jax: 0.10.0
libtpu: 0.0.40
codegen_flags: <defaults>
</compile_context>

<pallas_src>
import math

import jax
import jax.numpy as jnp
from jax.experimental import pallas as pl
from jax.experimental.pallas import tpu as pltpu

# --- model hyper-parameters (input_dim == d_model) ---
D_MODEL = 32
N_HEAD = 4
HEAD_DIM = D_MODEL // N_HEAD
N_LAYERS = 2
DIM_FF = 128
NUM_CLASSES = 10
LN_EPS = 1e-5
OUT_PAD = 128                      # lane-dense logits / packed-vector slab width

# row indices inside the packed (L, 8, OUT_PAD) per-layer vector slab
_B_OUT, _LN1_W, _LN1_B, _LN2_W, _LN2_B, _FF2_B, _B_IN, _FF1_B = range(8)


def _layer_norm(x, gamma, beta):
    mu = jnp.mean(x, axis=-1, keepdims=True)
    var = jnp.mean((x - mu) ** 2, axis=-1, keepdims=True)
    inv = jax.lax.rsqrt(var + LN_EPS)
    return (x - mu) * inv * gamma + beta


def transformer_kernel(
    x_ref,       # (BT, S)         scalar sequences for this batch tile
    pe_ref,      # (S, D)          sinusoidal positional-encoding table
    w_in_ref,    # (L, D, 3D)      attention in-proj (pre-transposed)
    w_out_ref,   # (L, D, D)       attention out-proj (pre-transposed)
    ff1_w_ref,   # (L, D, FF)      (pre-transposed)
    ff2_w_ref,   # (L, FF, D)      (pre-transposed)
    vec_ref,     # (L, 8, OUT_PAD) packed per-layer vectors (see row indices)
    cls_ref,     # (D+8, OUT_PAD)  rows 0:D classifier weight, row D bias (zero-padded)
    o_ref,       # (BT, OUT_PAD)   lane-dense logits slab
):
    bt, seq = x_ref.shape
    scale = 1.0 / math.sqrt(HEAD_DIM)

    # embed (scalar -> broadcast over d_model) + positional encoding,
    # matching `x.unsqueeze(-1)` then `x + pe[:seq]` broadcasting in PyTorch.
    h = x_ref[...][..., None] + pe_ref[...][None, :, :]          # (BT, S, D)
    h = h.reshape(bt * seq, D_MODEL)                              # flatten rows

    for l in range(N_LAYERS):                                     # static layer unroll
        vd = vec_ref[l]                                           # (8, OUT_PAD)
        b_out_l = vd[_B_OUT:_B_OUT + 1, :D_MODEL]
        b_in_l = vd[_B_IN:_B_IN + 1, :3 * D_MODEL]
        ff1_b_l = vd[_FF1_B:_FF1_B + 1, :DIM_FF]
        ff2_b_l = vd[_FF2_B:_FF2_B + 1, :D_MODEL]

        # ---- self-attention block (post-norm, eval-mode dropout == identity) ----
        qkv = jnp.dot(h, w_in_ref[l],
                      preferred_element_type=jnp.float32) + b_in_l        # (BT*S, 3D)
        qkv = qkv.reshape(bt, seq, 3 * D_MODEL)
        q = qkv[:, :, 0 * D_MODEL:1 * D_MODEL]
        k = qkv[:, :, 1 * D_MODEL:2 * D_MODEL]
        v = qkv[:, :, 2 * D_MODEL:3 * D_MODEL]

        w_out_l = w_out_ref[l]                                    # (D, D)
        attn = jnp.zeros((bt * seq, D_MODEL), jnp.float32)
        # short static head loop; every op inside is batched over the whole
        # batch tile (3-D single-batch-dim einsums on the MXU).
        for hd in range(N_HEAD):
            sl = slice(hd * HEAD_DIM, (hd + 1) * HEAD_DIM)
            qh, kh, vh = q[:, :, sl], k[:, :, sl], v[:, :, sl]    # (BT, S, Dh)
            s_h = jnp.einsum('bsd,btd->bst', qh * scale, kh,
                             preferred_element_type=jnp.float32)           # (BT, S, S)
            s_h = s_h - jnp.max(s_h, axis=-1, keepdims=True)
            p = jnp.exp(s_h)
            p = p * pl.reciprocal(jnp.sum(p, axis=-1, keepdims=True), approx=True)
            oh = jnp.einsum('bst,btd->bsd', p, vh,
                            preferred_element_type=jnp.float32)            # (BT, S, Dh)
            # concat-over-heads followed by out-proj == sum of per-head projections
            attn = attn + jnp.dot(oh.reshape(bt * seq, HEAD_DIM), w_out_l[sl, :],
                                  preferred_element_type=jnp.float32)
        attn = attn + b_out_l
        h = _layer_norm(h + attn,
                        vd[_LN1_W:_LN1_W + 1, :D_MODEL],
                        vd[_LN1_B:_LN1_B + 1, :D_MODEL])

        # ---- feed-forward block ----
        ff = jnp.dot(h, ff1_w_ref[l],
                     preferred_element_type=jnp.float32) + ff1_b_l         # (BT*S, FF)
        ff = jnp.maximum(ff, 0.0)                                 # ReLU
        ff = jnp.dot(ff, ff2_w_ref[l],
                     preferred_element_type=jnp.float32) + ff2_b_l
        h = _layer_norm(h + ff,
                        vd[_LN2_W:_LN2_W + 1, :D_MODEL],
                        vd[_LN2_B:_LN2_B + 1, :D_MODEL])

    # out = classifier(x[-1, :, :]) -> last sequence position of every batch row.
    last = h.reshape(bt, seq, D_MODEL)[:, seq - 1, :]             # (BT, D)
    o_ref[...] = (jnp.dot(last, cls_ref[0:D_MODEL, :],
                          preferred_element_type=jnp.float32)
                  + cls_ref[D_MODEL:D_MODEL + 1, :])


def _pad_lanes(a, width=OUT_PAD):
    return jnp.pad(a, ((0, 0), (0, 0), (0, width - a.shape[-1])))


def transformer_forward(x, pe, params, b_tile=256):
    """x: (B, S) float32 scalar sequences -> (B, NUM_CLASSES) logits."""
    B, S = x.shape
    x = x.astype(jnp.float32)

    bt = max(1, min(b_tile, B))
    n_tiles = -(-B // bt)
    Bp = n_tiles * bt
    if Bp != B:
        x = jnp.pad(x, ((0, Bp - B), (0, 0)))     # padded rows computed then dropped

    # pack the eight per-layer (L, 1, width) vectors into one (L, 8, OUT_PAD) slab
    vecs = jnp.concatenate(
        [_pad_lanes(params[k]) for k in
         ("b_out", "ln1_w", "ln1_b", "ln2_w", "ln2_b", "ff2_b", "b_in", "ff1_b")],
        axis=1)                                                   # (L, 8, OUT_PAD)

    # lane-dense classifier: weight rows 0:D, bias row D, zero-padded to (D+8, OUT_PAD)
    cls_w = jnp.pad(params["cls_w"], ((0, 0), (0, OUT_PAD - NUM_CLASSES)))
    cls_b = jnp.pad(params["cls_b"], ((0, 0), (0, OUT_PAD - NUM_CLASSES)))
    cls_pack = jnp.concatenate(
        [cls_w, cls_b, jnp.zeros((7, OUT_PAD), jnp.float32)], axis=0)   # (D+8, OUT_PAD)

    big = [params["w_in"], params["w_out"], params["ff1_w"], params["ff2_w"],
           vecs, cls_pack]

    def full_spec(a):
        nd = a.ndim
        return pl.BlockSpec(a.shape, lambda b, nd=nd: (0,) * nd)

    in_specs = [pl.BlockSpec((bt, S), lambda b: (b, 0)),   # dense batch-tile of scalars
                full_spec(pe)]
    in_specs += [full_spec(p) for p in big]

    out = pl.pallas_call(
        transformer_kernel,
        out_shape=jax.ShapeDtypeStruct((Bp, OUT_PAD), jnp.float32),
        grid=(n_tiles,),
        in_specs=in_specs,
        out_specs=pl.BlockSpec((bt, OUT_PAD), lambda b: (b, 0)),
        compiler_params=pltpu.CompilerParams(
            dimension_semantics=("parallel",)),     # megacore shards batch tiles
    )(x, pe, *big)
    return out[:B, :NUM_CLASSES]


def make_positional_encoding(seq_len, d_model):
    position = jnp.arange(seq_len, dtype=jnp.float32)[:, None]
    div_term = jnp.exp(jnp.arange(0, d_model, 2, dtype=jnp.float32)
                       * (-math.log(10000.0) / d_model))
    pe = jnp.zeros((seq_len, d_model), dtype=jnp.float32)
    pe = pe.at[:, 0::2].set(jnp.sin(position * div_term))
    pe = pe.at[:, 1::2].set(jnp.cos(position * div_term))
    return pe


def make_params(key):
    L, D, FF, C = N_LAYERS, D_MODEL, DIM_FF, NUM_CLASSES
    ks = jax.random.split(key, 8)

    def init(k, shape, fan_in):
        return (jax.random.normal(k, shape, dtype=jnp.float32)
                / math.sqrt(fan_in)).astype(jnp.float32)

    params = {
        # attention projections (stored pre-transposed: (in, out))
        "w_in":  init(ks[0], (L, D, 3 * D), D),
        "b_in":  jnp.zeros((L, 1, 3 * D), jnp.float32),
        "w_out": init(ks[1], (L, D, D), D),
        "b_out": jnp.zeros((L, 1, D), jnp.float32),
        # layer norms
        "ln1_w": jnp.ones((L, 1, D), jnp.float32),
        "ln1_b": jnp.zeros((L, 1, D), jnp.float32),
        "ln2_w": jnp.ones((L, 1, D), jnp.float32),
        "ln2_b": jnp.zeros((L, 1, D), jnp.float32),
        # feed-forward (pre-transposed)
        "ff1_w": init(ks[2], (L, D, FF), D),
        "ff1_b": jnp.zeros((L, 1, FF), jnp.float32),
        "ff2_w": init(ks[3], (L, FF, D), FF),
        "ff2_b": jnp.zeros((L, 1, D), jnp.float32),
        # classifier (pre-transposed)
        "cls_w": init(ks[4], (D, C), D),
        "cls_b": jnp.zeros((1, C), jnp.float32),
    }
    return params


if __name__ == "__main__":
    key = jax.random.PRNGKey(0)
    k_x, k_p = jax.random.split(key)

    B, S = 2, 8                      # batch=2, seq=8, d_model(=input_dim)=32
    x = jax.random.normal(k_x, (B, S), dtype=jnp.float32)

    pe = make_positional_encoding(S, D_MODEL)
    params = make_params(k_p)

    logits = transformer_forward(x, pe, params)
    logits = jax.block_until_ready(logits)

    assert logits.shape == (B, NUM_CLASSES)
    assert jnp.all(jnp.isfinite(logits))
    print("KERNEL_OK")
</pallas_src>

<mosaic_0001>
module attributes {stable_mosaic.version = 11 : i64} {
  func.func @transformer_kernel(%arg0: i32, %arg1: memref<2x8xf32, #tpu.memory_space<vmem>>, %arg2: memref<8x32xf32, #tpu.memory_space<vmem>>, %arg3: memref<2x32x96xf32, #tpu.memory_space<vmem>>, %arg4: memref<2x32x32xf32, #tpu.memory_space<vmem>>, %arg5: memref<2x32x128xf32, #tpu.memory_space<vmem>>, %arg6: memref<2x128x32xf32, #tpu.memory_space<vmem>>, %arg7: memref<2x8x128xf32, #tpu.memory_space<vmem>>, %arg8: memref<40x128xf32, #tpu.memory_space<vmem>>, %arg9: memref<2x128xf32, #tpu.memory_space<vmem>>) attributes {dimension_semantics = [#tpu.dimension_semantics<parallel>], iteration_bounds = array<i64: 1>, scalar_prefetch = 0 : i64, scratch_operands = 0 : i64, tpu.core_type = #tpu.core_type<tc>, window_params = [{transform_indices = @transform_0, window_bounds = array<i64: 2, 8>}, {pipeline_mode = #tpu.pipeline_mode<synchronous>, transform_indices = @transform_1, window_bounds = array<i64: 8, 32>}, {pipeline_mode = #tpu.pipeline_mode<synchronous>, transform_indices = @transform_2, window_bounds = array<i64: 2, 32, 96>}, {pipeline_mode = #tpu.pipeline_mode<synchronous>, transform_indices = @transform_3, window_bounds = array<i64: 2, 32, 32>}, {pipeline_mode = #tpu.pipeline_mode<synchronous>, transform_indices = @transform_4, window_bounds = array<i64: 2, 32, 128>}, {pipeline_mode = #tpu.pipeline_mode<synchronous>, transform_indices = @transform_5, window_bounds = array<i64: 2, 128, 32>}, {pipeline_mode = #tpu.pipeline_mode<synchronous>, transform_indices = @transform_6, window_bounds = array<i64: 2, 8, 128>}, {pipeline_mode = #tpu.pipeline_mode<synchronous>, transform_indices = @transform_7, window_bounds = array<i64: 40, 128>}, {transform_indices = @transform_8, window_bounds = array<i64: 2, 128>}]} {
    %c0 = arith.constant 0 : index
    %c0_0 = arith.constant 0 : index
    %0 = vector.load %arg1[%c0, %c0_0] : memref<2x8xf32, #tpu.memory_space<vmem>>, vector<2x8xf32>
    %1 = vector.shape_cast %0 : vector<2x8xf32> to vector<2x8x1xf32>
    %c0_1 = arith.constant 0 : index
    %c0_2 = arith.constant 0 : index
    %2 = vector.load %arg2[%c0_1, %c0_2] : memref<8x32xf32, #tpu.memory_space<vmem>>, vector<8x32xf32>
    %3 = vector.shape_cast %2 : vector<8x32xf32> to vector<1x8x32xf32>
    %4 = vector.broadcast %1 : vector<2x8x1xf32> to vector<2x8x32xf32>
    %5 = vector.broadcast %3 : vector<1x8x32xf32> to vector<2x8x32xf32>
    %6 = arith.addf %4, %5 : vector<2x8x32xf32>
    %7 = vector.shape_cast %6 : vector<2x8x32xf32> to vector<16x32xf32>
    %c0_3 = arith.constant 0 : index
    %c0_4 = arith.constant 0 : index
    %c0_5 = arith.constant 0 : index
    %8 = vector.load %arg7[%c0_3, %c0_4, %c0_5] : memref<2x8x128xf32, #tpu.memory_space<vmem>>, vector<1x8x128xf32>
    %9 = vector.shape_cast %8 : vector<1x8x128xf32> to vector<8x128xf32>
    %10 = vector.extract_strided_slice %9 {offsets = [0, 0], sizes = [1, 32], strides = [1, 1]} : vector<8x128xf32> to vector<1x32xf32>
    %11 = vector.extract_strided_slice %9 {offsets = [6, 0], sizes = [1, 96], strides = [1, 1]} : vector<8x128xf32> to vector<1x96xf32>
    %12 = vector.extract_strided_slice %9 {offsets = [7, 0], sizes = [1, 128], strides = [1, 1]} : vector<8x128xf32> to vector<1x128xf32>
    %13 = vector.extract_strided_slice %9 {offsets = [5, 0], sizes = [1, 32], strides = [1, 1]} : vector<8x128xf32> to vector<1x32xf32>
    %c0_6 = arith.constant 0 : index
    %c0_7 = arith.constant 0 : index
    %c0_8 = arith.constant 0 : index
    %14 = vector.load %arg3[%c0_6, %c0_7, %c0_8] : memref<2x32x96xf32, #tpu.memory_space<vmem>>, vector<1x32x96xf32>
    %15 = vector.shape_cast %14 : vector<1x32x96xf32> to vector<32x96xf32>
    %cst = arith.constant dense<0.000000e+00> : vector<16x96xf32>
    %16 = tpu.matmul %7, %15, %cst {dimension_numbers = #tpu.dot_dimension_numbers<[1], [0], [0], [1], [0, 0, 1, 1], [], []>} : vector<16x32xf32>, vector<32x96xf32>, vector<16x96xf32> -> vector<16x96xf32>
    %17 = vector.broadcast %11 : vector<1x96xf32> to vector<16x96xf32>
    %18 = arith.addf %16, %17 : vector<16x96xf32>
    %19 = vector.shape_cast %18 : vector<16x96xf32> to vector<2x8x96xf32>
    %20 = vector.extract_strided_slice %19 {offsets = [0, 0, 0], sizes = [2, 8, 32], strides = [1, 1, 1]} : vector<2x8x96xf32> to vector<2x8x32xf32>
    %21 = vector.extract_strided_slice %19 {offsets = [0, 0, 32], sizes = [2, 8, 32], strides = [1, 1, 1]} : vector<2x8x96xf32> to vector<2x8x32xf32>
    %22 = vector.extract_strided_slice %19 {offsets = [0, 0, 64], sizes = [2, 8, 32], strides = [1, 1, 1]} : vector<2x8x96xf32> to vector<2x8x32xf32>
    %c0_9 = arith.constant 0 : index
    %c0_10 = arith.constant 0 : index
    %c0_11 = arith.constant 0 : index
    %23 = vector.load %arg4[%c0_9, %c0_10, %c0_11] : memref<2x32x32xf32, #tpu.memory_space<vmem>>, vector<1x32x32xf32>
    %24 = vector.shape_cast %23 : vector<1x32x32xf32> to vector<32x32xf32>
    %cst_12 = arith.constant 0.000000e+00 : f32
    %25 = vector.broadcast %cst_12 : f32 to vector<16x32xf32>
    %26 = vector.extract_strided_slice %20 {offsets = [0, 0, 0], sizes = [2, 8, 8], strides = [1, 1, 1]} : vector<2x8x32xf32> to vector<2x8x8xf32>
    %27 = vector.extract_strided_slice %21 {offsets = [0, 0, 0], sizes = [2, 8, 8], strides = [1, 1, 1]} : vector<2x8x32xf32> to vector<2x8x8xf32>
    %28 = vector.extract_strided_slice %22 {offsets = [0, 0, 0], sizes = [2, 8, 8], strides = [1, 1, 1]} : vector<2x8x32xf32> to vector<2x8x8xf32>
    %cst_13 = arith.constant 0.353553385 : f32
    %29 = vector.broadcast %cst_13 : f32 to vector<2x8x8xf32>
    %30 = arith.mulf %26, %29 : vector<2x8x8xf32>
    "tpu.trace_start"() <{level = 10 : i32, message = "bsd,btd->bst"}> : () -> ()
    %cst_14 = arith.constant dense<0.000000e+00> : vector<2x8x8xf32>
    %31 = tpu.matmul %30, %27, %cst_14 {dimension_numbers = #tpu.dot_dimension_numbers<[2], [2], [1], [1], [0, 0, 0, 1, 1, 1], [0], [0]>} : vector<2x8x8xf32>, vector<2x8x8xf32>, vector<2x8x8xf32> -> vector<2x8x8xf32>
    "tpu.trace_stop"() : () -> ()
    %cst_15 = arith.constant dense<0xFF800000> : vector<2x8xf32>
    %32 = vector.multi_reduction <maximumf>, %31, %cst_15 [2] : vector<2x8x8xf32> to vector<2x8xf32>
    %33 = vector.shape_cast %32 : vector<2x8xf32> to vector<2x8x1xf32>
    %34 = vector.broadcast %33 : vector<2x8x1xf32> to vector<2x8x8xf32>
    %35 = arith.subf %31, %34 : vector<2x8x8xf32>
    %36 = math.exp %35 : vector<2x8x8xf32>
    %cst_16 = arith.constant dense<0.000000e+00> : vector<2x8xf32>
    %37 = vector.multi_reduction <add>, %36, %cst_16 [2] : vector<2x8x8xf32> to vector<2x8xf32>
    %38 = vector.shape_cast %37 : vector<2x8xf32> to vector<2x8x1xf32>
    %39 = tpu.reciprocal %38 {approx = true} : vector<2x8x1xf32> -> vector<2x8x1xf32>
    %40 = vector.broadcast %39 : vector<2x8x1xf32> to vector<2x8x8xf32>
    %41 = arith.mulf %36, %40 : vector<2x8x8xf32>
    "tpu.trace_start"() <{level = 10 : i32, message = "bst,btd->bsd"}> : () -> ()
    %cst_17 = arith.constant dense<0.000000e+00> : vector<2x8x8xf32>
    %42 = tpu.matmul %41, %28, %cst_17 {dimension_numbers = #tpu.dot_dimension_numbers<[2], [1], [1], [2], [0, 0, 0, 1, 1, 2], [0], [0]>} : vector<2x8x8xf32>, vector<2x8x8xf32>, vector<2x8x8xf32> -> vector<2x8x8xf32>
    "tpu.trace_stop"() : () -> ()
    %43 = vector.shape_cast %42 : vector<2x8x8xf32> to vector<16x8xf32>
    %44 = vector.extract_strided_slice %24 {offsets = [0, 0], sizes = [8, 32], strides = [1, 1]} : vector<32x32xf32> to vector<8x32xf32>
    %cst_18 = arith.constant dense<0.000000e+00> : vector<16x32xf32>
    %45 = tpu.matmul %43, %44, %cst_18 {dimension_numbers = #tpu.dot_dimension_numbers<[1], [0], [0], [1], [0, 0, 1, 1], [], []>} : vector<16x8xf32>, vector<8x32xf32>, vector<16x32xf32> -> vector<16x32xf32>
    %46 = arith.addf %25, %45 : vector<16x32xf32>
    %47 = vector.extract_strided_slice %20 {offsets = [0, 0, 8], sizes = [2, 8, 8], strides = [1, 1, 1]} : vector<2x8x32xf32> to vector<2x8x8xf32>
    %48 = vector.extract_strided_slice %21 {offsets = [0, 0, 8], sizes = [2, 8, 8], strides = [1, 1, 1]} : vector<2x8x32xf32> to vector<2x8x8xf32>
    %49 = vector.extract_strided_slice %22 {offsets = [0, 0, 8], sizes = [2, 8, 8], strides = [1, 1, 1]} : vector<2x8x32xf32> to vector<2x8x8xf32>
    %cst_19 = arith.constant 0.353553385 : f32
    %50 = vector.broadcast %cst_19 : f32 to vector<2x8x8xf32>
    %51 = arith.mulf %47, %50 : vector<2x8x8xf32>
    "tpu.trace_start"() <{level = 10 : i32, message = "bsd,btd->bst"}> : () -> ()
    %cst_20 = arith.constant dense<0.000000e+00> : vector<2x8x8xf32>
    %52 = tpu.matmul %51, %48, %cst_20 {dimension_numbers = #tpu.dot_dimension_numbers<[2], [2], [1], [1], [0, 0, 0, 1, 1, 1], [0], [0]>} : vector<2x8x8xf32>, vector<2x8x8xf32>, vector<2x8x8xf32> -> vector<2x8x8xf32>
    "tpu.trace_stop"() : () -> ()
    %cst_21 = arith.constant dense<0xFF800000> : vector<2x8xf32>
    %53 = vector.multi_reduction <maximumf>, %52, %cst_21 [2] : vector<2x8x8xf32> to vector<2x8xf32>
    %54 = vector.shape_cast %53 : vector<2x8xf32> to vector<2x8x1xf32>
    %55 = vector.broadcast %54 : vector<2x8x1xf32> to vector<2x8x8xf32>
    %56 = arith.subf %52, %55 : vector<2x8x8xf32>
    %57 = math.exp %56 : vector<2x8x8xf32>
    %cst_22 = arith.constant dense<0.000000e+00> : vector<2x8xf32>
    %58 = vector.multi_reduction <add>, %57, %cst_22 [2] : vector<2x8x8xf32> to vector<2x8xf32>
    %59 = vector.shape_cast %58 : vector<2x8xf32> to vector<2x8x1xf32>
    %60 = tpu.reciprocal %59 {approx = true} : vector<2x8x1xf32> -> vector<2x8x1xf32>
    %61 = vector.broadcast %60 : vector<2x8x1xf32> to vector<2x8x8xf32>
    %62 = arith.mulf %57, %61 : vector<2x8x8xf32>
    "tpu.trace_start"() <{level = 10 : i32, message = "bst,btd->bsd"}> : () -> ()
    %cst_23 = arith.constant dense<0.000000e+00> : vector<2x8x8xf32>
    %63 = tpu.matmul %62, %49, %cst_23 {dimension_numbers = #tpu.dot_dimension_numbers<[2], [1], [1], [2], [0, 0, 0, 1, 1, 2], [0], [0]>} : vector<2x8x8xf32>, vector<2x8x8xf32>, vector<2x8x8xf32> -> vector<2x8x8xf32>
    "tpu.trace_stop"() : () -> ()
    %64 = vector.shape_cast %63 : vector<2x8x8xf32> to vector<16x8xf32>
    %65 = vector.extract_strided_slice %24 {offsets = [8, 0], sizes = [8, 32], strides = [1, 1]} : vector<32x32xf32> to vector<8x32xf32>
    %cst_24 = arith.constant dense<0.000000e+00> : vector<16x32xf32>
    %66 = tpu.matmul %64, %65, %cst_24 {dimension_numbers = #tpu.dot_dimension_numbers<[1], [0], [0], [1], [0, 0, 1, 1], [], []>} : vector<16x8xf32>, vector<8x32xf32>, vector<16x32xf32> -> vector<16x32xf32>
    %67 = arith.addf %46, %66 : vector<16x32xf32>
    %68 = vector.extract_strided_slice %20 {offsets = [0, 0, 16], sizes = [2, 8, 8], strides = [1, 1, 1]} : vector<2x8x32xf32> to vector<2x8x8xf32>
    %69 = vector.extract_strided_slice %21 {offsets = [0, 0, 16], sizes = [2, 8, 8], strides = [1, 1, 1]} : vector<2x8x32xf32> to vector<2x8x8xf32>
    %70 = vector.extract_strided_slice %22 {offsets = [0, 0, 16], sizes = [2, 8, 8], strides = [1, 1, 1]} : vector<2x8x32xf32> to vector<2x8x8xf32>
    %cst_25 = arith.constant 0.353553385 : f32
    %71 = vector.broadcast %cst_25 : f32 to vector<2x8x8xf32>
    %72 = arith.mulf %68, %71 : vector<2x8x8xf32>
    "tpu.trace_start"() <{level = 10 : i32, message = "bsd,btd->bst"}> : () -> ()
    %cst_26 = arith.constant dense<0.000000e+00> : vector<2x8x8xf32>
    %73 = tpu.matmul %72, %69, %cst_26 {dimension_numbers = #tpu.dot_dimension_numbers<[2], [2], [1], [1], [0, 0, 0, 1, 1, 1], [0], [0]>} : vector<2x8x8xf32>, vector<2x8x8xf32>, vector<2x8x8xf32> -> vector<2x8x8xf32>
    "tpu.trace_stop"() : () -> ()
    %cst_27 = arith.constant dense<0xFF800000> : vector<2x8xf32>
    %74 = vector.multi_reduction <maximumf>, %73, %cst_27 [2] : vector<2x8x8xf32> to vector<2x8xf32>
    %75 = vector.shape_cast %74 : vector<2x8xf32> to vector<2x8x1xf32>
    %76 = vector.broadcast %75 : vector<2x8x1xf32> to vector<2x8x8xf32>
    %77 = arith.subf %73, %76 : vector<2x8x8xf32>
    %78 = math.exp %77 : vector<2x8x8xf32>
    %cst_28 = arith.constant dense<0.000000e+00> : vector<2x8xf32>
    %79 = vector.multi_reduction <add>, %78, %cst_28 [2] : vector<2x8x8xf32> to vector<2x8xf32>
    %80 = vector.shape_cast %79 : vector<2x8xf32> to vector<2x8x1xf32>
    %81 = tpu.reciprocal %80 {approx = true} : vector<2x8x1xf32> -> vector<2x8x1xf32>
    %82 = vector.broadcast %81 : vector<2x8x1xf32> to vector<2x8x8xf32>
    %83 = arith.mulf %78, %82 : vector<2x8x8xf32>
    "tpu.trace_start"() <{level = 10 : i32, message = "bst,btd->bsd"}> : () -> ()
    %cst_29 = arith.constant dense<0.000000e+00> : vector<2x8x8xf32>
    %84 = tpu.matmul %83, %70, %cst_29 {dimension_numbers = #tpu.dot_dimension_numbers<[2], [1], [1], [2], [0, 0, 0, 1, 1, 2], [0], [0]>} : vector<2x8x8xf32>, vector<2x8x8xf32>, vector<2x8x8xf32> -> vector<2x8x8xf32>
    "tpu.trace_stop"() : () -> ()
    %85 = vector.shape_cast %84 : vector<2x8x8xf32> to vector<16x8xf32>
    %86 = vector.extract_strided_slice %24 {offsets = [16, 0], sizes = [8, 32], strides = [1, 1]} : vector<32x32xf32> to vector<8x32xf32>
    %cst_30 = arith.constant dense<0.000000e+00> : vector<16x32xf32>
    %87 = tpu.matmul %85, %86, %cst_30 {dimension_numbers = #tpu.dot_dimension_numbers<[1], [0], [0], [1], [0, 0, 1, 1], [], []>} : vector<16x8xf32>, vector<8x32xf32>, vector<16x32xf32> -> vector<16x32xf32>
    %88 = arith.addf %67, %87 : vector<16x32xf32>
    %89 = vector.extract_strided_slice %20 {offsets = [0, 0, 24], sizes = [2, 8, 8], strides = [1, 1, 1]} : vector<2x8x32xf32> to vector<2x8x8xf32>
    %90 = vector.extract_strided_slice %21 {offsets = [0, 0, 24], sizes = [2, 8, 8], strides = [1, 1, 1]} : vector<2x8x32xf32> to vector<2x8x8xf32>
    %91 = vector.extract_strided_slice %22 {offsets = [0, 0, 24], sizes = [2, 8, 8], strides = [1, 1, 1]} : vector<2x8x32xf32> to vector<2x8x8xf32>
    %cst_31 = arith.constant 0.353553385 : f32
    %92 = vector.broadcast %cst_31 : f32 to vector<2x8x8xf32>
    %93 = arith.mulf %89, %92 : vector<2x8x8xf32>
    "tpu.trace_start"() <{level = 10 : i32, message = "bsd,btd->bst"}> : () -> ()
    %cst_32 = arith.constant dense<0.000000e+00> : vector<2x8x8xf32>
    %94 = tpu.matmul %93, %90, %cst_32 {dimension_numbers = #tpu.dot_dimension_numbers<[2], [2], [1], [1], [0, 0, 0, 1, 1, 1], [0], [0]>} : vector<2x8x8xf32>, vector<2x8x8xf32>, vector<2x8x8xf32> -> vector<2x8x8xf32>
    "tpu.trace_stop"() : () -> ()
    %cst_33 = arith.constant dense<0xFF800000> : vector<2x8xf32>
    %95 = vector.multi_reduction <maximumf>, %94, %cst_33 [2] : vector<2x8x8xf32> to vector<2x8xf32>
    %96 = vector.shape_cast %95 : vector<2x8xf32> to vector<2x8x1xf32>
    %97 = vector.broadcast %96 : vector<2x8x1xf32> to vector<2x8x8xf32>
    %98 = arith.subf %94, %97 : vector<2x8x8xf32>
    %99 = math.exp %98 : vector<2x8x8xf32>
    %cst_34 = arith.constant dense<0.000000e+00> : vector<2x8xf32>
    %100 = vector.multi_reduction <add>, %99, %cst_34 [2] : vector<2x8x8xf32> to vector<2x8xf32>
    %101 = vector.shape_cast %100 : vector<2x8xf32> to vector<2x8x1xf32>
    %102 = tpu.reciprocal %101 {approx = true} : vector<2x8x1xf32> -> vector<2x8x1xf32>
    %103 = vector.broadcast %102 : vector<2x8x1xf32> to vector<2x8x8xf32>
    %104 = arith.mulf %99, %103 : vector<2x8x8xf32>
    "tpu.trace_start"() <{level = 10 : i32, message = "bst,btd->bsd"}> : () -> ()
    %cst_35 = arith.constant dense<0.000000e+00> : vector<2x8x8xf32>
    %105 = tpu.matmul %104, %91, %cst_35 {dimension_numbers = #tpu.dot_dimension_numbers<[2], [1], [1], [2], [0, 0, 0, 1, 1, 2], [0], [0]>} : vector<2x8x8xf32>, vector<2x8x8xf32>, vector<2x8x8xf32> -> vector<2x8x8xf32>
    "tpu.trace_stop"() : () -> ()
    %106 = vector.shape_cast %105 : vector<2x8x8xf32> to vector<16x8xf32>
    %107 = vector.extract_strided_slice %24 {offsets = [24, 0], sizes = [8, 32], strides = [1, 1]} : vector<32x32xf32> to vector<8x32xf32>
    %cst_36 = arith.constant dense<0.000000e+00> : vector<16x32xf32>
    %108 = tpu.matmul %106, %107, %cst_36 {dimension_numbers = #tpu.dot_dimension_numbers<[1], [0], [0], [1], [0, 0, 1, 1], [], []>} : vector<16x8xf32>, vector<8x32xf32>, vector<16x32xf32> -> vector<16x32xf32>
    %109 = arith.addf %88, %108 : vector<16x32xf32>
    %110 = vector.broadcast %10 : vector<1x32xf32> to vector<16x32xf32>
    %111 = arith.addf %109, %110 : vector<16x32xf32>
    %112 = arith.addf %7, %111 : vector<16x32xf32>
    %113 = vector.extract_strided_slice %9 {offsets = [1, 0], sizes = [1, 32], strides = [1, 1]} : vector<8x128xf32> to vector<1x32xf32>
    %114 = vector.extract_strided_slice %9 {offsets = [2, 0], sizes = [1, 32], strides = [1, 1]} : vector<8x128xf32> to vector<1x32xf32>
    %cst_37 = arith.constant dense<0.000000e+00> : vector<16xf32>
    %115 = vector.multi_reduction <add>, %112, %cst_37 [1] : vector<16x32xf32> to vector<16xf32>
    %116 = vector.shape_cast %115 : vector<16xf32> to vector<16x1xf32>
    %cst_38 = arith.constant 3.200000e+01 : f32
    %117 = vector.broadcast %cst_38 : f32 to vector<16x1xf32>
    %118 = arith.divf %116, %117 : vector<16x1xf32>
    %119 = vector.broadcast %118 : vector<16x1xf32> to vector<16x32xf32>
    %120 = arith.subf %112, %119 : vector<16x32xf32>
    %121 = arith.mulf %120, %120 : vector<16x32xf32>
    %cst_39 = arith.constant dense<0.000000e+00> : vector<16xf32>
    %122 = vector.multi_reduction <add>, %121, %cst_39 [1] : vector<16x32xf32> to vector<16xf32>
    %123 = vector.shape_cast %122 : vector<16xf32> to vector<16x1xf32>
    %cst_40 = arith.constant 3.200000e+01 : f32
    %124 = vector.broadcast %cst_40 : f32 to vector<16x1xf32>
    %125 = arith.divf %123, %124 : vector<16x1xf32>
    %cst_41 = arith.constant 9.99999974E-6 : f32
    %126 = vector.broadcast %cst_41 : f32 to vector<16x1xf32>
    %127 = arith.addf %125, %126 : vector<16x1xf32>
    %128 = math.rsqrt %127 : vector<16x1xf32>
    %129 = vector.broadcast %118 : vector<16x1xf32> to vector<16x32xf32>
    %130 = arith.subf %112, %129 : vector<16x32xf32>
    %131 = vector.broadcast %128 : vector<16x1xf32> to vector<16x32xf32>
    %132 = arith.mulf %130, %131 : vector<16x32xf32>
    %133 = vector.broadcast %113 : vector<1x32xf32> to vector<16x32xf32>
    %134 = arith.mulf %132, %133 : vector<16x32xf32>
    %135 = vector.broadcast %114 : vector<1x32xf32> to vector<16x32xf32>
    %136 = arith.addf %134, %135 : vector<16x32xf32>
    %c0_42 = arith.constant 0 : index
    %c0_43 = arith.constant 0 : index
    %c0_44 = arith.constant 0 : index
    %137 = vector.load %arg5[%c0_42, %c0_43, %c0_44] : memref<2x32x128xf32, #tpu.memory_space<vmem>>, vector<1x32x128xf32>
    %138 = vector.shape_cast %137 : vector<1x32x128xf32> to vector<32x128xf32>
    %cst_45 = arith.constant dense<0.000000e+00> : vector<16x128xf32>
    %139 = tpu.matmul %136, %138, %cst_45 {dimension_numbers = #tpu.dot_dimension_numbers<[1], [0], [0], [1], [0, 0, 1, 1], [], []>} : vector<16x32xf32>, vector<32x128xf32>, vector<16x128xf32> -> vector<16x128xf32>
    %140 = vector.broadcast %12 : vector<1x128xf32> to vector<16x128xf32>
    %141 = arith.addf %139, %140 : vector<16x128xf32>
    %cst_46 = arith.constant 0.000000e+00 : f32
    %142 = vector.broadcast %cst_46 : f32 to vector<16x128xf32>
    %143 = arith.maximumf %141, %142 : vector<16x128xf32>
    %c0_47 = arith.constant 0 : index
    %c0_48 = arith.constant 0 : index
    %c0_49 = arith.constant 0 : index
    %144 = vector.load %arg6[%c0_47, %c0_48, %c0_49] : memref<2x128x32xf32, #tpu.memory_space<vmem>>, vector<1x128x32xf32>
    %145 = vector.shape_cast %144 : vector<1x128x32xf32> to vector<128x32xf32>
    %cst_50 = arith.constant dense<0.000000e+00> : vector<16x32xf32>
    %146 = tpu.matmul %143, %145, %cst_50 {dimension_numbers = #tpu.dot_dimension_numbers<[1], [0], [0], [1], [0, 0, 1, 1], [], []>} : vector<16x128xf32>, vector<128x32xf32>, vector<16x32xf32> -> vector<16x32xf32>
    %147 = vector.broadcast %13 : vector<1x32xf32> to vector<16x32xf32>
    %148 = arith.addf %146, %147 : vector<16x32xf32>
    %149 = arith.addf %136, %148 : vector<16x32xf32>
    %150 = vector.extract_strided_slice %9 {offsets = [3, 0], sizes = [1, 32], strides = [1, 1]} : vector<8x128xf32> to vector<1x32xf32>
    %151 = vector.extract_strided_slice %9 {offsets = [4, 0], sizes = [1, 32], strides = [1, 1]} : vector<8x128xf32> to vector<1x32xf32>
    %cst_51 = arith.constant dense<0.000000e+00> : vector<16xf32>
    %152 = vector.multi_reduction <add>, %149, %cst_51 [1] : vector<16x32xf32> to vector<16xf32>
    %153 = vector.shape_cast %152 : vector<16xf32> to vector<16x1xf32>
    %cst_52 = arith.constant 3.200000e+01 : f32
    %154 = vector.broadcast %cst_52 : f32 to vector<16x1xf32>
    %155 = arith.divf %153, %154 : vector<16x1xf32>
    %156 = vector.broadcast %155 : vector<16x1xf32> to vector<16x32xf32>
    %157 = arith.subf %149, %156 : vector<16x32xf32>
    %158 = arith.mulf %157, %157 : vector<16x32xf32>
    %cst_53 = arith.constant dense<0.000000e+00> : vector<16xf32>
    %159 = vector.multi_reduction <add>, %158, %cst_53 [1] : vector<16x32xf32> to vector<16xf32>
    %160 = vector.shape_cast %159 : vector<16xf32> to vector<16x1xf32>
    %cst_54 = arith.constant 3.200000e+01 : f32
    %161 = vector.broadcast %cst_54 : f32 to vector<16x1xf32>
    %162 = arith.divf %160, %161 : vector<16x1xf32>
    %cst_55 = arith.constant 9.99999974E-6 : f32
    %163 = vector.broadcast %cst_55 : f32 to vector<16x1xf32>
    %164 = arith.addf %162, %163 : vector<16x1xf32>
    %165 = math.rsqrt %164 : vector<16x1xf32>
    %166 = vector.broadcast %155 : vector<16x1xf32> to vector<16x32xf32>
    %167 = arith.subf %149, %166 : vector<16x32xf32>
    %168 = vector.broadcast %165 : vector<16x1xf32> to vector<16x32xf32>
    %169 = arith.mulf %167, %168 : vector<16x32xf32>
    %170 = vector.broadcast %150 : vector<1x32xf32> to vector<16x32xf32>
    %171 = arith.mulf %169, %170 : vector<16x32xf32>
    %172 = vector.broadcast %151 : vector<1x32xf32> to vector<16x32xf32>
    %173 = arith.addf %171, %172 : vector<16x32xf32>
    %c1 = arith.constant 1 : index
    %c0_56 = arith.constant 0 : index
    %c0_57 = arith.constant 0 : index
    %174 = vector.load %arg7[%c1, %c0_56, %c0_57] : memref<2x8x128xf32, #tpu.memory_space<vmem>>, vector<1x8x128xf32>
    %175 = vector.shape_cast %174 : vector<1x8x128xf32> to vector<8x128xf32>
    %176 = vector.extract_strided_slice %175 {offsets = [0, 0], sizes = [1, 32], strides = [1, 1]} : vector<8x128xf32> to vector<1x32xf32>
    %177 = vector.extract_strided_slice %175 {offsets = [6, 0], sizes = [1, 96], strides = [1, 1]} : vector<8x128xf32> to vector<1x96xf32>
    %178 = vector.extract_strided_slice %175 {offsets = [7, 0], sizes = [1, 128], strides = [1, 1]} : vector<8x128xf32> to vector<1x128xf32>
    %179 = vector.extract_strided_slice %175 {offsets = [5, 0], sizes = [1, 32], strides = [1, 1]} : vector<8x128xf32> to vector<1x32xf32>
    %c1_58 = arith.constant 1 : index
    %c0_59 = arith.constant 0 : index
    %c0_60 = arith.constant 0 : index
    %180 = vector.load %arg3[%c1_58, %c0_59, %c0_60] : memref<2x32x96xf32, #tpu.memory_space<vmem>>, vector<1x32x96xf32>
    %181 = vector.shape_cast %180 : vector<1x32x96xf32> to vector<32x96xf32>
    %cst_61 = arith.constant dense<0.000000e+00> : vector<16x96xf32>
    %182 = tpu.matmul %173, %181, %cst_61 {dimension_numbers = #tpu.dot_dimension_numbers<[1], [0], [0], [1], [0, 0, 1, 1], [], []>} : vector<16x32xf32>, vector<32x96xf32>, vector<16x96xf32> -> vector<16x96xf32>
    %183 = vector.broadcast %177 : vector<1x96xf32> to vector<16x96xf32>
    %184 = arith.addf %182, %183 : vector<16x96xf32>
    %185 = vector.shape_cast %184 : vector<16x96xf32> to vector<2x8x96xf32>
    %186 = vector.extract_strided_slice %185 {offsets = [0, 0, 0], sizes = [2, 8, 32], strides = [1, 1, 1]} : vector<2x8x96xf32> to vector<2x8x32xf32>
    %187 = vector.extract_strided_slice %185 {offsets = [0, 0, 32], sizes = [2, 8, 32], strides = [1, 1, 1]} : vector<2x8x96xf32> to vector<2x8x32xf32>
    %188 = vector.extract_strided_slice %185 {offsets = [0, 0, 64], sizes = [2, 8, 32], strides = [1, 1, 1]} : vector<2x8x96xf32> to vector<2x8x32xf32>
    %c1_62 = arith.constant 1 : index
    %c0_63 = arith.constant 0 : index
    %c0_64 = arith.constant 0 : index
    %189 = vector.load %arg4[%c1_62, %c0_63, %c0_64] : memref<2x32x32xf32, #tpu.memory_space<vmem>>, vector<1x32x32xf32>
    %190 = vector.shape_cast %189 : vector<1x32x32xf32> to vector<32x32xf32>
    %cst_65 = arith.constant 0.000000e+00 : f32
    %191 = vector.broadcast %cst_65 : f32 to vector<16x32xf32>
    %192 = vector.extract_strided_slice %186 {offsets = [0, 0, 0], sizes = [2, 8, 8], strides = [1, 1, 1]} : vector<2x8x32xf32> to vector<2x8x8xf32>
    %193 = vector.extract_strided_slice %187 {offsets = [0, 0, 0], sizes = [2, 8, 8], strides = [1, 1, 1]} : vector<2x8x32xf32> to vector<2x8x8xf32>
    %194 = vector.extract_strided_slice %188 {offsets = [0, 0, 0], sizes = [2, 8, 8], strides = [1, 1, 1]} : vector<2x8x32xf32> to vector<2x8x8xf32>
    %cst_66 = arith.constant 0.353553385 : f32
    %195 = vector.broadcast %cst_66 : f32 to vector<2x8x8xf32>
    %196 = arith.mulf %192, %195 : vector<2x8x8xf32>
    "tpu.trace_start"() <{level = 10 : i32, message = "bsd,btd->bst"}> : () -> ()
    %cst_67 = arith.constant dense<0.000000e+00> : vector<2x8x8xf32>
    %197 = tpu.matmul %196, %193, %cst_67 {dimension_numbers = #tpu.dot_dimension_numbers<[2], [2], [1], [1], [0, 0, 0, 1, 1, 1], [0], [0]>} : vector<2x8x8xf32>, vector<2x8x8xf32>, vector<2x8x8xf32> -> vector<2x8x8xf32>
    "tpu.trace_stop"() : () -> ()
    %cst_68 = arith.constant dense<0xFF800000> : vector<2x8xf32>
    %198 = vector.multi_reduction <maximumf>, %197, %cst_68 [2] : vector<2x8x8xf32> to vector<2x8xf32>
    %199 = vector.shape_cast %198 : vector<2x8xf32> to vector<2x8x1xf32>
    %200 = vector.broadcast %199 : vector<2x8x1xf32> to vector<2x8x8xf32>
    %201 = arith.subf %197, %200 : vector<2x8x8xf32>
    %202 = math.exp %201 : vector<2x8x8xf32>
    %cst_69 = arith.constant dense<0.000000e+00> : vector<2x8xf32>
    %203 = vector.multi_reduction <add>, %202, %cst_69 [2] : vector<2x8x8xf32> to vector<2x8xf32>
    %204 = vector.shape_cast %203 : vector<2x8xf32> to vector<2x8x1xf32>
    %205 = tpu.reciprocal %204 {approx = true} : vector<2x8x1xf32> -> vector<2x8x1xf32>
    %206 = vector.broadcast %205 : vector<2x8x1xf32> to vector<2x8x8xf32>
    %207 = arith.mulf %202, %206 : vector<2x8x8xf32>
    "tpu.trace_start"() <{level = 10 : i32, message = "bst,btd->bsd"}> : () -> ()
    %cst_70 = arith.constant dense<0.000000e+00> : vector<2x8x8xf32>
    %208 = tpu.matmul %207, %194, %cst_70 {dimension_numbers = #tpu.dot_dimension_numbers<[2], [1], [1], [2], [0, 0, 0, 1, 1, 2], [0], [0]>} : vector<2x8x8xf32>, vector<2x8x8xf32>, vector<2x8x8xf32> -> vector<2x8x8xf32>
    "tpu.trace_stop"() : () -> ()
    %209 = vector.shape_cast %208 : vector<2x8x8xf32> to vector<16x8xf32>
    %210 = vector.extract_strided_slice %190 {offsets = [0, 0], sizes = [8, 32], strides = [1, 1]} : vector<32x32xf32> to vector<8x32xf32>
    %cst_71 = arith.constant dense<0.000000e+00> : vector<16x32xf32>
    %211 = tpu.matmul %209, %210, %cst_71 {dimension_numbers = #tpu.dot_dimension_numbers<[1], [0], [0], [1], [0, 0, 1, 1], [], []>} : vector<16x8xf32>, vector<8x32xf32>, vector<16x32xf32> -> vector<16x32xf32>
    %212 = arith.addf %191, %211 : vector<16x32xf32>
    %213 = vector.extract_strided_slice %186 {offsets = [0, 0, 8], sizes = [2, 8, 8], strides = [1, 1, 1]} : vector<2x8x32xf32> to vector<2x8x8xf32>
    %214 = vector.extract_strided_slice %187 {offsets = [0, 0, 8], sizes = [2, 8, 8], strides = [1, 1, 1]} : vector<2x8x32xf32> to vector<2x8x8xf32>
    %215 = vector.extract_strided_slice %188 {offsets = [0, 0, 8], sizes = [2, 8, 8], strides = [1, 1, 1]} : vector<2x8x32xf32> to vector<2x8x8xf32>
    %cst_72 = arith.constant 0.353553385 : f32
    %216 = vector.broadcast %cst_72 : f32 to vector<2x8x8xf32>
    %217 = arith.mulf %213, %216 : vector<2x8x8xf32>
    "tpu.trace_start"() <{level = 10 : i32, message = "bsd,btd->bst"}> : () -> ()
    %cst_73 = arith.constant dense<0.000000e+00> : vector<2x8x8xf32>
    %218 = tpu.matmul %217, %214, %cst_73 {dimension_numbers = #tpu.dot_dimension_numbers<[2], [2], [1], [1], [0, 0, 0, 1, 1, 1], [0], [0]>} : vector<2x8x8xf32>, vector<2x8x8xf32>, vector<2x8x8xf32> -> vector<2x8x8xf32>
    "tpu.trace_stop"() : () -> ()
    %cst_74 = arith.constant dense<0xFF800000> : vector<2x8xf32>
    %219 = vector.multi_reduction <maximumf>, %218, %cst_74 [2] : vector<2x8x8xf32> to vector<2x8xf32>
    %220 = vector.shape_cast %219 : vector<2x8xf32> to vector<2x8x1xf32>
    %221 = vector.broadcast %220 : vector<2x8x1xf32> to vector<2x8x8xf32>
    %222 = arith.subf %218, %221 : vector<2x8x8xf32>
    %223 = math.exp %222 : vector<2x8x8xf32>
    %cst_75 = arith.constant dense<0.000000e+00> : vector<2x8xf32>
    %224 = vector.multi_reduction <add>, %223, %cst_75 [2] : vector<2x8x8xf32> to vector<2x8xf32>
    %225 = vector.shape_cast %224 : vector<2x8xf32> to vector<2x8x1xf32>
    %226 = tpu.reciprocal %225 {approx = true} : vector<2x8x1xf32> -> vector<2x8x1xf32>
    %227 = vector.broadcast %226 : vector<2x8x1xf32> to vector<2x8x8xf32>
    %228 = arith.mulf %223, %227 : vector<2x8x8xf32>
    "tpu.trace_start"() <{level = 10 : i32, message = "bst,btd->bsd"}> : () -> ()
    %cst_76 = arith.constant dense<0.000000e+00> : vector<2x8x8xf32>
    %229 = tpu.matmul %228, %215, %cst_76 {dimension_numbers = #tpu.dot_dimension_numbers<[2], [1], [1], [2], [0, 0, 0, 1, 1, 2], [0], [0]>} : vector<2x8x8xf32>, vector<2x8x8xf32>, vector<2x8x8xf32> -> vector<2x8x8xf32>
    "tpu.trace_stop"() : () -> ()
    %230 = vector.shape_cast %229 : vector<2x8x8xf32> to vector<16x8xf32>
    %231 = vector.extract_strided_slice %190 {offsets = [8, 0], sizes = [8, 32], strides = [1, 1]} : vector<32x32xf32> to vector<8x32xf32>
    %cst_77 = arith.constant dense<0.000000e+00> : vector<16x32xf32>
    %232 = tpu.matmul %230, %231, %cst_77 {dimension_numbers = #tpu.dot_dimension_numbers<[1], [0], [0], [1], [0, 0, 1, 1], [], []>} : vector<16x8xf32>, vector<8x32xf32>, vector<16x32xf32> -> vector<16x32xf32>
    %233 = arith.addf %212, %232 : vector<16x32xf32>
    %234 = vector.extract_strided_slice %186 {offsets = [0, 0, 16], sizes = [2, 8, 8], strides = [1, 1, 1]} : vector<2x8x32xf32> to vector<2x8x8xf32>
    %235 = vector.extract_strided_slice %187 {offsets = [0, 0, 16], sizes = [2, 8, 8], strides = [1, 1, 1]} : vector<2x8x32xf32> to vector<2x8x8xf32>
    %236 = vector.extract_strided_slice %188 {offsets = [0, 0, 16], sizes = [2, 8, 8], strides = [1, 1, 1]} : vector<2x8x32xf32> to vector<2x8x8xf32>
    %cst_78 = arith.constant 0.353553385 : f32
    %237 = vector.broadcast %cst_78 : f32 to vector<2x8x8xf32>
    %238 = arith.mulf %234, %237 : vector<2x8x8xf32>
    "tpu.trace_start"() <{level = 10 : i32, message = "bsd,btd->bst"}> : () -> ()
    %cst_79 = arith.constant dense<0.000000e+00> : vector<2x8x8xf32>
    %239 = tpu.matmul %238, %235, %cst_79 {dimension_numbers = #tpu.dot_dimension_numbers<[2], [2], [1], [1], [0, 0, 0, 1, 1, 1], [0], [0]>} : vector<2x8x8xf32>, vector<2x8x8xf32>, vector<2x8x8xf32> -> vector<2x8x8xf32>
    "tpu.trace_stop"() : () -> ()
    %cst_80 = arith.constant dense<0xFF800000> : vector<2x8xf32>
    %240 = vector.multi_reduction <maximumf>, %239, %cst_80 [2] : vector<2x8x8xf32> to vector<2x8xf32>
    %241 = vector.shape_cast %240 : vector<2x8xf32> to vector<2x8x1xf32>
    %242 = vector.broadcast %241 : vector<2x8x1xf32> to vector<2x8x8xf32>
    %243 = arith.subf %239, %242 : vector<2x8x8xf32>
    %244 = math.exp %243 : vector<2x8x8xf32>
    %cst_81 = arith.constant dense<0.000000e+00> : vector<2x8xf32>
    %245 = vector.multi_reduction <add>, %244, %cst_81 [2] : vector<2x8x8xf32> to vector<2x8xf32>
    %246 = vector.shape_cast %245 : vector<2x8xf32> to vector<2x8x1xf32>
    %247 = tpu.reciprocal %246 {approx = true} : vector<2x8x1xf32> -> vector<2x8x1xf32>
    %248 = vector.broadcast %247 : vector<2x8x1xf32> to vector<2x8x8xf32>
    %249 = arith.mulf %244, %248 : vector<2x8x8xf32>
    "tpu.trace_start"() <{level = 10 : i32, message = "bst,btd->bsd"}> : () -> ()
    %cst_82 = arith.constant dense<0.000000e+00> : vector<2x8x8xf32>
    %250 = tpu.matmul %249, %236, %cst_82 {dimension_numbers = #tpu.dot_dimension_numbers<[2], [1], [1], [2], [0, 0, 0, 1, 1, 2], [0], [0]>} : vector<2x8x8xf32>, vector<2x8x8xf32>, vector<2x8x8xf32> -> vector<2x8x8xf32>
    "tpu.trace_stop"() : () -> ()
    %251 = vector.shape_cast %250 : vector<2x8x8xf32> to vector<16x8xf32>
    %252 = vector.extract_strided_slice %190 {offsets = [16, 0], sizes = [8, 32], strides = [1, 1]} : vector<32x32xf32> to vector<8x32xf32>
    %cst_83 = arith.constant dense<0.000000e+00> : vector<16x32xf32>
    %253 = tpu.matmul %251, %252, %cst_83 {dimension_numbers = #tpu.dot_dimension_numbers<[1], [0], [0], [1], [0, 0, 1, 1], [], []>} : vector<16x8xf32>, vector<8x32xf32>, vector<16x32xf32> -> vector<16x32xf32>
    %254 = arith.addf %233, %253 : vector<16x32xf32>
    %255 = vector.extract_strided_slice %186 {offsets = [0, 0, 24], sizes = [2, 8, 8], strides = [1, 1, 1]} : vector<2x8x32xf32> to vector<2x8x8xf32>
    %256 = vector.extract_strided_slice %187 {offsets = [0, 0, 24], sizes = [2, 8, 8], strides = [1, 1, 1]} : vector<2x8x32xf32> to vector<2x8x8xf32>
    %257 = vector.extract_strided_slice %188 {offsets = [0, 0, 24], sizes = [2, 8, 8], strides = [1, 1, 1]} : vector<2x8x32xf32> to vector<2x8x8xf32>
    %cst_84 = arith.constant 0.353553385 : f32
    %258 = vector.broadcast %cst_84 : f32 to vector<2x8x8xf32>
    %259 = arith.mulf %255, %258 : vector<2x8x8xf32>
    "tpu.trace_start"() <{level = 10 : i32, message = "bsd,btd->bst"}> : () -> ()
    %cst_85 = arith.constant dense<0.000000e+00> : vector<2x8x8xf32>
    %260 = tpu.matmul %259, %256, %cst_85 {dimension_numbers = #tpu.dot_dimension_numbers<[2], [2], [1], [1], [0, 0, 0, 1, 1, 1], [0], [0]>} : vector<2x8x8xf32>, vector<2x8x8xf32>, vector<2x8x8xf32> -> vector<2x8x8xf32>
    "tpu.trace_stop"() : () -> ()
    %cst_86 = arith.constant dense<0xFF800000> : vector<2x8xf32>
    %261 = vector.multi_reduction <maximumf>, %260, %cst_86 [2] : vector<2x8x8xf32> to vector<2x8xf32>
    %262 = vector.shape_cast %261 : vector<2x8xf32> to vector<2x8x1xf32>
    %263 = vector.broadcast %262 : vector<2x8x1xf32> to vector<2x8x8xf32>
    %264 = arith.subf %260, %263 : vector<2x8x8xf32>
    %265 = math.exp %264 : vector<2x8x8xf32>
    %cst_87 = arith.constant dense<0.000000e+00> : vector<2x8xf32>
    %266 = vector.multi_reduction <add>, %265, %cst_87 [2] : vector<2x8x8xf32> to vector<2x8xf32>
    %267 = vector.shape_cast %266 : vector<2x8xf32> to vector<2x8x1xf32>
    %268 = tpu.reciprocal %267 {approx = true} : vector<2x8x1xf32> -> vector<2x8x1xf32>
    %269 = vector.broadcast %268 : vector<2x8x1xf32> to vector<2x8x8xf32>
    %270 = arith.mulf %265, %269 : vector<2x8x8xf32>
    "tpu.trace_start"() <{level = 10 : i32, message = "bst,btd->bsd"}> : () -> ()
    %cst_88 = arith.constant dense<0.000000e+00> : vector<2x8x8xf32>
    %271 = tpu.matmul %270, %257, %cst_88 {dimension_numbers = #tpu.dot_dimension_numbers<[2], [1], [1], [2], [0, 0, 0, 1, 1, 2], [0], [0]>} : vector<2x8x8xf32>, vector<2x8x8xf32>, vector<2x8x8xf32> -> vector<2x8x8xf32>
    "tpu.trace_stop"() : () -> ()
    %272 = vector.shape_cast %271 : vector<2x8x8xf32> to vector<16x8xf32>
    %273 = vector.extract_strided_slice %190 {offsets = [24, 0], sizes = [8, 32], strides = [1, 1]} : vector<32x32xf32> to vector<8x32xf32>
    %cst_89 = arith.constant dense<0.000000e+00> : vector<16x32xf32>
    %274 = tpu.matmul %272, %273, %cst_89 {dimension_numbers = #tpu.dot_dimension_numbers<[1], [0], [0], [1], [0, 0, 1, 1], [], []>} : vector<16x8xf32>, vector<8x32xf32>, vector<16x32xf32> -> vector<16x32xf32>
    %275 = arith.addf %254, %274 : vector<16x32xf32>
    %276 = vector.broadcast %176 : vector<1x32xf32> to vector<16x32xf32>
    %277 = arith.addf %275, %276 : vector<16x32xf32>
    %278 = arith.addf %173, %277 : vector<16x32xf32>
    %279 = vector.extract_strided_slice %175 {offsets = [1, 0], sizes = [1, 32], strides = [1, 1]} : vector<8x128xf32> to vector<1x32xf32>
    %280 = vector.extract_strided_slice %175 {offsets = [2, 0], sizes = [1, 32], strides = [1, 1]} : vector<8x128xf32> to vector<1x32xf32>
    %cst_90 = arith.constant dense<0.000000e+00> : vector<16xf32>
    %281 = vector.multi_reduction <add>, %278, %cst_90 [1] : vector<16x32xf32> to vector<16xf32>
    %282 = vector.shape_cast %281 : vector<16xf32> to vector<16x1xf32>
    %cst_91 = arith.constant 3.200000e+01 : f32
    %283 = vector.broadcast %cst_91 : f32 to vector<16x1xf32>
    %284 = arith.divf %282, %283 : vector<16x1xf32>
    %285 = vector.broadcast %284 : vector<16x1xf32> to vector<16x32xf32>
    %286 = arith.subf %278, %285 : vector<16x32xf32>
    %287 = arith.mulf %286, %286 : vector<16x32xf32>
    %cst_92 = arith.constant dense<0.000000e+00> : vector<16xf32>
    %288 = vector.multi_reduction <add>, %287, %cst_92 [1] : vector<16x32xf32> to vector<16xf32>
    %289 = vector.shape_cast %288 : vector<16xf32> to vector<16x1xf32>
    %cst_93 = arith.constant 3.200000e+01 : f32
    %290 = vector.broadcast %cst_93 : f32 to vector<16x1xf32>
    %291 = arith.divf %289, %290 : vector<16x1xf32>
    %cst_94 = arith.constant 9.99999974E-6 : f32
    %292 = vector.broadcast %cst_94 : f32 to vector<16x1xf32>
    %293 = arith.addf %291, %292 : vector<16x1xf32>
    %294 = math.rsqrt %293 : vector<16x1xf32>
    %295 = vector.broadcast %284 : vector<16x1xf32> to vector<16x32xf32>
    %296 = arith.subf %278, %295 : vector<16x32xf32>
    %297 = vector.broadcast %294 : vector<16x1xf32> to vector<16x32xf32>
    %298 = arith.mulf %296, %297 : vector<16x32xf32>
    %299 = vector.broadcast %279 : vector<1x32xf32> to vector<16x32xf32>
    %300 = arith.mulf %298, %299 : vector<16x32xf32>
    %301 = vector.broadcast %280 : vector<1x32xf32> to vector<16x32xf32>
    %302 = arith.addf %300, %301 : vector<16x32xf32>
    %c1_95 = arith.constant 1 : index
    %c0_96 = arith.constant 0 : index
    %c0_97 = arith.constant 0 : index
    %303 = vector.load %arg5[%c1_95, %c0_96, %c0_97] : memref<2x32x128xf32, #tpu.memory_space<vmem>>, vector<1x32x128xf32>
    %304 = vector.shape_cast %303 : vector<1x32x128xf32> to vector<32x128xf32>
    %cst_98 = arith.constant dense<0.000000e+00> : vector<16x128xf32>
    %305 = tpu.matmul %302, %304, %cst_98 {dimension_numbers = #tpu.dot_dimension_numbers<[1], [0], [0], [1], [0, 0, 1, 1], [], []>} : vector<16x32xf32>, vector<32x128xf32>, vector<16x128xf32> -> vector<16x128xf32>
    %306 = vector.broadcast %178 : vector<1x128xf32> to vector<16x128xf32>
    %307 = arith.addf %305, %306 : vector<16x128xf32>
    %cst_99 = arith.constant 0.000000e+00 : f32
    %308 = vector.broadcast %cst_99 : f32 to vector<16x128xf32>
    %309 = arith.maximumf %307, %308 : vector<16x128xf32>
    %c1_100 = arith.constant 1 : index
    %c0_101 = arith.constant 0 : index
    %c0_102 = arith.constant 0 : index
    %310 = vector.load %arg6[%c1_100, %c0_101, %c0_102] : memref<2x128x32xf32, #tpu.memory_space<vmem>>, vector<1x128x32xf32>
    %311 = vector.shape_cast %310 : vector<1x128x32xf32> to vector<128x32xf32>
    %cst_103 = arith.constant dense<0.000000e+00> : vector<16x32xf32>
    %312 = tpu.matmul %309, %311, %cst_103 {dimension_numbers = #tpu.dot_dimension_numbers<[1], [0], [0], [1], [0, 0, 1, 1], [], []>} : vector<16x128xf32>, vector<128x32xf32>, vector<16x32xf32> -> vector<16x32xf32>
    %313 = vector.broadcast %179 : vector<1x32xf32> to vector<16x32xf32>
    %314 = arith.addf %312, %313 : vector<16x32xf32>
    %315 = arith.addf %302, %314 : vector<16x32xf32>
    %316 = vector.extract_strided_slice %175 {offsets = [3, 0], sizes = [1, 32], strides = [1, 1]} : vector<8x128xf32> to vector<1x32xf32>
    %317 = vector.extract_strided_slice %175 {offsets = [4, 0], sizes = [1, 32], strides = [1, 1]} : vector<8x128xf32> to vector<1x32xf32>
    %cst_104 = arith.constant dense<0.000000e+00> : vector<16xf32>
    %318 = vector.multi_reduction <add>, %315, %cst_104 [1] : vector<16x32xf32> to vector<16xf32>
    %319 = vector.shape_cast %318 : vector<16xf32> to vector<16x1xf32>
    %cst_105 = arith.constant 3.200000e+01 : f32
    %320 = vector.broadcast %cst_105 : f32 to vector<16x1xf32>
    %321 = arith.divf %319, %320 : vector<16x1xf32>
    %322 = vector.broadcast %321 : vector<16x1xf32> to vector<16x32xf32>
    %323 = arith.subf %315, %322 : vector<16x32xf32>
    %324 = arith.mulf %323, %323 : vector<16x32xf32>
    %cst_106 = arith.constant dense<0.000000e+00> : vector<16xf32>
    %325 = vector.multi_reduction <add>, %324, %cst_106 [1] : vector<16x32xf32> to vector<16xf32>
    %326 = vector.shape_cast %325 : vector<16xf32> to vector<16x1xf32>
    %cst_107 = arith.constant 3.200000e+01 : f32
    %327 = vector.broadcast %cst_107 : f32 to vector<16x1xf32>
    %328 = arith.divf %326, %327 : vector<16x1xf32>
    %cst_108 = arith.constant 9.99999974E-6 : f32
    %329 = vector.broadcast %cst_108 : f32 to vector<16x1xf32>
    %330 = arith.addf %328, %329 : vector<16x1xf32>
    %331 = math.rsqrt %330 : vector<16x1xf32>
    %332 = vector.broadcast %321 : vector<16x1xf32> to vector<16x32xf32>
    %333 = arith.subf %315, %332 : vector<16x32xf32>
    %334 = vector.broadcast %331 : vector<16x1xf32> to vector<16x32xf32>
    %335 = arith.mulf %333, %334 : vector<16x32xf32>
    %336 = vector.broadcast %316 : vector<1x32xf32> to vector<16x32xf32>
    %337 = arith.mulf %335, %336 : vector<16x32xf32>
    %338 = vector.broadcast %317 : vector<1x32xf32> to vector<16x32xf32>
    %339 = arith.addf %337, %338 : vector<16x32xf32>
    %340 = vector.shape_cast %339 : vector<16x32xf32> to vector<2x8x32xf32>
    %341 = vector.extract_strided_slice %340 {offsets = [0, 7, 0], sizes = [2, 1, 32], strides = [1, 1, 1]} : vector<2x8x32xf32> to vector<2x1x32xf32>
    %342 = vector.shape_cast %341 : vector<2x1x32xf32> to vector<2x32xf32>
    %c0_109 = arith.constant 0 : index
    %c0_110 = arith.constant 0 : index
    %343 = vector.load %arg8[%c0_109, %c0_110] : memref<40x128xf32, #tpu.memory_space<vmem>>, vector<32x128xf32>
    %cst_111 = arith.constant dense<0.000000e+00> : vector<2x128xf32>
    %344 = tpu.matmul %342, %343, %cst_111 {dimension_numbers = #tpu.dot_dimension_numbers<[1], [0], [0], [1], [0, 0, 1, 1], [], []>} : vector<2x32xf32>, vector<32x128xf32>, vector<2x128xf32> -> vector<2x128xf32>
    %c32 = arith.constant 32 : index
    %c0_112 = arith.constant 0 : index
    %345 = vector.load %arg8[%c32, %c0_112] : memref<40x128xf32, #tpu.memory_space<vmem>>, vector<1x128xf32>
    %346 = vector.broadcast %345 : vector<1x128xf32> to vector<2x128xf32>
    %347 = arith.addf %344, %346 : vector<2x128xf32>
    %c0_113 = arith.constant 0 : index
    %c0_114 = arith.constant 0 : index
    %348 = vector.load %arg9[%c0_113, %c0_114] : memref<2x128xf32, #tpu.memory_space<vmem>>, vector<2x128xf32>
    tpu.vector_store %arg9[%c0_113, %c0_114], %347 {strides = array<i32>} : memref<2x128xf32, #tpu.memory_space<vmem>>, vector<2x128xf32>,
    return
  }
  func.func @transform_0(%arg0: i32) -> (i32, i32) {
    %c0_i32 = arith.constant 0 : i32
    %c0_i32_0 = arith.constant 0 : i32
    return %arg0, %c0_i32 : i32, i32
  }
  func.func @transform_1(%arg0: i32) -> (i32, i32) {
    %c0_i32 = arith.constant 0 : i32
    %c0_i32_0 = arith.constant 0 : i32
    %c0_i32_1 = arith.constant 0 : i32
    return %c0_i32, %c0_i32_0 : i32, i32
  }
  func.func @transform_2(%arg0: i32) -> (i32, i32, i32) {
    %c0_i32 = arith.constant 0 : i32
    %c0_i32_0 = arith.constant 0 : i32
    %c0_i32_1 = arith.constant 0 : i32
    %c0_i32_2 = arith.constant 0 : i32
    return %c0_i32, %c0_i32_0, %c0_i32_1 : i32, i32, i32
  }
  func.func @transform_3(%arg0: i32) -> (i32, i32, i32) {
    %c0_i32 = arith.constant 0 : i32
    %c0_i32_0 = arith.constant 0 : i32
    %c0_i32_1 = arith.constant 0 : i32
    %c0_i32_2 = arith.constant 0 : i32
    return %c0_i32, %c0_i32_0, %c0_i32_1 : i32, i32, i32
  }
  func.func @transform_4(%arg0: i32) -> (i32, i32, i32) {
    %c0_i32 = arith.constant 0 : i32
    %c0_i32_0 = arith.constant 0 : i32
    %c0_i32_1 = arith.constant 0 : i32
    %c0_i32_2 = arith.constant 0 : i32
    return %c0_i32, %c0_i32_0, %c0_i32_1 : i32, i32, i32
  }
  func.func @transform_5(%arg0: i32) -> (i32, i32, i32) {
    %c0_i32 = arith.constant 0 : i32
    %c0_i32_0 = arith.constant 0 : i32
    %c0_i32_1 = arith.constant 0 : i32
    %c0_i32_2 = arith.constant 0 : i32
    return %c0_i32, %c0_i32_0, %c0_i32_1 : i32, i32, i32
  }
  func.func @transform_6(%arg0: i32) -> (i32, i32, i32) {
    %c0_i32 = arith.constant 0 : i32
    %c0_i32_0 = arith.constant 0 : i32
    %c0_i32_1 = arith.constant 0 : i32
    %c0_i32_2 = arith.constant 0 : i32
    return %c0_i32, %c0_i32_0, %c0_i32_1 : i32, i32, i32
  }
  func.func @transform_7(%arg0: i32) -> (i32, i32) {
    %c0_i32 = arith.constant 0 : i32
    %c0_i32_0 = arith.constant 0 : i32
    %c0_i32_1 = arith.constant 0 : i32
    return %c0_i32, %c0_i32_0 : i32, i32
  }
  func.func @transform_8(%arg0: i32) -> (i32, i32) {
    %c0_i32 = arith.constant 0 : i32
    %c0_i32_0 = arith.constant 0 : i32
    return %arg0, %c0_i32 : i32, i32
  }
}

</mosaic_0001>

<bundles_post_ra>
// kernel: tpu_custom_call.1
= control target key start
LH: loop header
LB: loop body
LE: loop exit
PB: predicated region body
PF: predicated region fallthrough
CT: control target
= control target key end

     0   :  { %v31_v0 = vlaneseq  ;;  %s5714_s0 = inlined_call_operand.vmem [shape: f32[2,8], index: 0, kind: input, shape index: {}]   ;;  %s5715_s1 = inlined_call_operand.vmem [shape: f32[8,32], index: 1, kind: input, shape index: {}]   ;;  %s5716_s2 = inlined_call_operand.vmem [shape: f32[2,32,96], index: 2, kind: input, shape index: {}]   ;;  %s5717_s3 = inlined_call_operand.vmem [shape: f32[2,32,32], index: 3, kind: input, shape index: {}]   ;;  %s5718_s4 = inlined_call_operand.vmem [shape: f32[2,32,128], index: 4, kind: input, shape index: {}]   ;;  %s5719_s5 = inlined_call_operand.vmem [shape: f32[2,128,32], index: 5, kind: input, shape index: {}]   ;;  %s5720_s6 = inlined_call_operand.vmem [shape: f32[2,8,128], index: 6, kind: input, shape index: {}]   ;;  %s5721_s7 = inlined_call_operand.vmem [shape: f32[40,128], index: 7, kind: input, shape index: {}]   ;;  %s5722_s8 = inlined_call_operand.hbm [shape: f32[2,128], index: 8, kind: output, shape index: {}]  }
   0x1   :  { %v49_v1 = vld [vmem:[%s5716_s2] sm:$0xff]  ;;  %v50_v2 = vld [vmem:[%s5716_s2 + $0x8] sm:$0xff]  ;;  %v51_v5 = vld [vmem:[%s5716_s2 + $0x10] sm:$0xff] }
   0x2   :  { %v5070_v3 = vshrl.u32 %v31_v0, 7  ;;  %v4771_v4 = vpack.c.bf16 %v50_v2, %v49_v1  ;;  %v52_v6 = vld [vmem:[%s5716_s2 + $0x18] sm:$0xff] }
   0x3   :  { %13 = vsyncpa [#allocation3], 0  ;;  %v30_v7 = vld [vmem:[%s5714_s0] sm:$0x3]  ;;  %v4775_v8 = vpack.c.bf16 %v52_v6, %v51_v5  ;;  %vm57_vm0 = vcmask 261120   ;;  %v5004_v18 = vmov 0.0  }
   0x4   :  { %v5082_v9 = vsub.s32 0, %v5070_v3  ;;  %v5085_v10 = vsub.s32 1, %v5070_v3  ;;  %4772 = vmatprep.subr.bf16.mxu1 %v4771_v4  ;;  %v45_v13 = vld [vmem:[%s5715_s1] sm:$0xff]  ;;  %4477 = vmatprep.subr.mxu0 %v5004_v18  ;;  %vm5005_vm1 = vmmov 0   ;;  %v55_v19 = vsub.s32 6, %v5070_v3  ;;  %s5006_s17 = smov 96  }
   0x5   :  { %4774 = vmatpush3.bf16.msra.mxu1 %v4771_v4  ;;  %4479 = vmatprep.mubr.msk.f32.mxu0 %vm5005_vm1, %v5004_v18  ;;  %v5110_v20 = vld [vmem:[%s5720_s6] sm:$0xff]  ;;  %vm148_vm2 = vcmask 64512   ;;  %s5007_s18 = smov 64   ;;  %s5008_s19 = smov 88   ;;  %vm4101_vm3 = vcmask 1041409  }
   0x6   :  { %v34_v11 = vrot.slane %v30_v7, %v5082_v9  ;;  %4776 = vmatprep.subr.bf16.mxu1 %v4775_v8  ;;  %v41_v12 = vrot.slane %v30_v7, %v5085_v10  ;;  %v56_v21 = vrot.slane %v5110_v20, %v55_v19  ;;  %s5009_s20 = smov 120   ;;  %s5010_s21 = smov 80  }
   0x7   :  { %s5011_s22 = smov 56   ;;  %s5012_s23 = smov 112  }
   0x8   :  { %36 = vbcast.lane.b32.xlu0 %v34_v11, 256  ;;  %s5013_s24 = smov 48   ;;  %s5014_s25 = smov 72  }
   0x9   :  { %4778 = vmatpush3.bf16.msra.mxu1 %v4775_v8  ;;  %s5015_s26 = smov 104   ;;  %s5016_s11 = smov 40  }
   0xa   :  { %4457 = vmatprep.subr.mxu1 %v5004_v18 }
   0xc   :  { %43 = vbcast.lane.b32.xlu0 %v41_v12, 256 }
  0x7a   :  { %v37_v14 = vpop.permute.xlu0 %36 }
  0x7b   :  { %v5092_v15 = vadd.f32 %v45_v13, %v37_v14 }
  0x7d   :  { %4454 = vmatprep.mubr.msk.f32.mxu1 %vm57_vm0, %v5092_v15 }
  0x7e   :  { %v44_v16 = vpop.permute.xlu0 %43 }
  0x7f   :  { %v5096_v17 = vadd.f32 %v45_v13, %v44_v16 }
  0x81   :  { %4455 = vmatmul.mubr.msk.f32.vlgmr.msra.gmra.mrb[0].mxu1 %vm57_vm0, %v5096_v17 }
  0x82   :  { %4459 = vmatprep.mubr.msk.f32.mxu1 %vm5005_vm1, %v5004_v18 }
 0x154   :  { %v4456_v22 = vpop.f32.mrb[0].mxu1 }
 0x155   :  { %v130_v23 = vpop.f32.mrb[1].mxu1  ;;  %v5119_v25 = vadd.f32 %v4456_v22, %v56_v21 }
 0x156   :  { %v5115_v24 = vadd.f32 %v130_v23, %v56_v21 }
 0x157   :  { %v5134_v29 = vmul.f32 0.35355338, %v5119_v25 }
 0x158   :  { %146 = vrot.lane.b32.xlu1 %v5115_v24, %s5006_s17  ;;  %v5126_v27 = vmul.f32 0.35355338, %v5115_v24 }
 0x15c   :  { %225 = vrot.lane.b32.xlu1 %v5119_v25, %s5006_s17 }
 0x1ca   :  { %v147_v26 = vpop.permute.xlu1 %146 }
 0x1cb   :  { %4458 = vmatpush3.xpose.msk.msra.mxu1 %vm148_vm2, %v147_v26 }
 0x1cc   :  { %4462 = vmatprep.subr.mxu1 %v5004_v18 }
 0x1ce   :  { %v226_v28 = vpop.permute.xlu1 %225  ;;  %4460 = vmatmul.mubr.msk.f32.vlgmr.msra.gmra.mrb[2].mxu1 %vm148_vm2, %v5126_v27 }
 0x1cf   :  { %4463 = vmatpush3.xpose.msk.msra.mxu1 %vm148_vm2, %v226_v28  ;;  %4464 = vmatprep.mubr.msk.f32.mxu1 %vm5005_vm1, %v5004_v18 }
 0x1d0   :  { %4467 = vmatprep.subr.mxu1 %v5004_v18 }
 0x1d2   :  { %4465 = vmatmul.mubr.msk.f32.vlgmr.msra.gmra.mrb[4].mxu1 %vm148_vm2, %v5134_v29 }
 0x1d3   :  { %4469 = vmatprep.mubr.msk.f32.mxu1 %vm5005_vm1, %v5004_v18 }
 0x2a1   :  { %v220_v30 = vpop.f32.mrb[2].mxu1 }
 0x2a2   :  { %v4461_v31 = vpop.f32.mrb[3].mxu1  ;;  %v302_v32 = vsel %vm148_vm2, %v220_v30, -inf }
 0x2a3   :  { %303 = vmax.xlane.f32.xlu0 %v302_v32 }
 0x2a5   :  { %v298_v33 = vpop.f32.mrb[4].mxu1 }
 0x2a6   :  { %v4466_v34 = vpop.f32.mrb[5].mxu1  ;;  %v305_v35 = vsel %vm148_vm2, %v298_v33, -inf }
 0x2a7   :  { %306 = vmax.xlane.f32.xlu1 %v305_v35 }
 0x2b8   :  { %324 = vrot.lane.b32.xlu1 %v5115_v24, %s5007_s18 }
 0x2bc   :  { %556 = vrot.lane.b32.xlu1 %v5119_v25, %s5008_s19 }
 0x2c0   :  { %554 = vrot.lane.b32.xlu1 %v5134_v29, %s5009_s20 }
 0x2c4   :  { %476 = vrot.lane.b32.xlu1 %v5126_v27, %s5009_s20 }
 0x2c8   :  { %970 = vrot.lane.b32.xlu1 %v5115_v24, %s5010_s21 }
 0x330   :  { %v304_v36 = vpop.xlane.xlu0 %303 }
 0x331   :  { %v308_v37 = vsub.f32 %v220_v30, %v304_v36 }
 0x333   :  { %v310_v38 = vmul.f32 1.442695, %v308_v37 }
 0x334   :  { %v307_v39 = vpop.xlane.xlu1 %306 }
 0x335   :  { %4900 = vpow2.f32 %v310_v38  ;;  %v309_v40 = vsub.f32 %v298_v33, %v307_v39 }
 0x337   :  { %v312_v41 = vmul.f32 1.442695, %v309_v40 }
 0x338   :  { %v325_v42 = vpop.permute.xlu1 %324 }
 0x339   :  { %4902 = vpow2.f32 %v312_v41  ;;  %4468 = vmatpush3.msra.mxu1 %v325_v42 }
 0x33a   :  { %4472 = vmatprep.subr.mxu1 %v5004_v18 }
 0x33c   :  { %v557_v48 = vpop.permute.xlu1 %556 }
 0x33f   :  { %v4901_v43 = vpop.eup %4900 }
 0x340   :  { %v314_v44 = vsel %vm148_vm2, %v4901_v43, 0.0  ;;  %v555_v51 = vpop.permute.xlu1 %554 }
 0x341   :  { %315 = vadd.xlane.f32.xlu0 %v314_v44 }
 0x343   :  { %v4903_v45 = vpop.eup %4902 }
 0x344   :  { %v317_v46 = vsel %vm148_vm2, %v4903_v45, 0.0  ;;  %v477_v56 = vpop.permute.xlu1 %476 }
 0x345   :  { %318 = vadd.xlane.f32.xlu0 %v317_v46  ;;  %v140_v46 = vld [vmem:[%s5717_s3 + $0x8] sm:$0xff] }
 0x348   :  { %v971_v13 = vpop.permute.xlu1 %970 }
 0x35b   :  { %400 = vrot.lane.b32.xlu0 %v5119_v25, %s5007_s18 }
 0x35f   :  { %478 = vrot.lane.b32.xlu0 %v5115_v24, %s5008_s19 }
 0x3ce   :  { %v316_v47 = vpop.xlane.xlu0 %315 }
 0x3cf   :  { %4904 = vrcp.f32 %v316_v47  ;;  %v139_v47 = vld [vmem:[%s5717_s3] sm:$0xff] }
 0x3d2   :  { %v319_v49 = vpop.xlane.xlu0 %318 }
 0x3d3   :  { %4906 = vrcp.f32 %v319_v49 }
 0x3d6   :  { %v401_v50 = vpop.permute.xlu0 %400 }
 0x3d9   :  { %v4905_v52 = vpop.eup %4904 }
 0x3da   :  { %v322_v53 = vmul.f32 %v4905_v52, %v4901_v43  ;;  %v479_v54 = vpop.permute.xlu0 %478 }
 0x3db   :  { %4478 = vmatpush3.xpose.msk.msra.mxu0 %vm148_vm2, %v479_v54 }
 0x3dc   :  { %4470 = vmatmul.mubr.msk.f32.vlgmr.msra.gmra.mrb[6].mxu1 %vm148_vm2, %v322_v53  ;;  %4487 = vmatprep.subr.mxu0 %v5004_v18 }
 0x3dd   :  { %v4907_v55 = vpop.eup %4906  ;;  %4473 = vmatpush3.msra.mxu1 %v401_v50  ;;  %4474 = vmatprep.mubr.msk.f32.mxu1 %vm5005_vm1, %v5004_v18 }
 0x3de   :  { %v323_v57 = vmul.f32 %v4907_v55, %v4903_v45  ;;  %4480 = vmatmul.mubr.msk.f32.vlgmr.msra.gmra.mrb[0].mxu0 %vm148_vm2, %v477_v56  ;;  %4482 = vmatprep.subr.mxu1 %v5004_v18 }
 0x3df   :  { %4489 = vmatprep.mubr.msk.f32.mxu0 %vm5005_vm1, %v5004_v18 }
 0x3e0   :  { %4475 = vmatmul.mubr.msk.f32.vlgmr.msra.gmra.mrb[8].mxu1 %vm148_vm2, %v323_v57 }
 0x3e1   :  { %4484 = vmatprep.mubr.msk.f32.mxu1 %vm5005_vm1, %v5004_v18 }
 0x3e4   :  { %4483 = vmatpush3.xpose.msk.msra.mxu1 %vm148_vm2, %v557_v48 }
 0x3e5   :  { %4492 = vmatprep.subr.mxu1 %v5004_v18 }
 0x3e7   :  { %4485 = vmatmul.mubr.msk.f32.vlgmr.msra.gmra.mrb[10].mxu1 %vm148_vm2, %v555_v51 }
 0x3e8   :  { %4494 = vmatprep.mubr.msk.f32.mxu1 %vm5005_vm1, %v5004_v18 }
 0x4af   :  { %v5177_v58 = vpop.f32.mrb[6].mxu1 }
 0x4b0   :  { %v4471_v59 = vpop.f32.mrb[7].mxu1 }
 0x4b1   :  { %v550_v60 = vpop.f32.mrb[0].mxu0 }
 0x4b2   :  { %v4481_v61 = vpop.f32.mrb[1].mxu0  ;;  %v632_v12 = vsel %vm148_vm2, %v550_v60, -inf }
 0x4b3   :  { %v5179_v62 = vpop.f32.mrb[8].mxu1 }
 0x4b4   :  { %v4476_v63 = vpop.f32.mrb[9].mxu1 }
 0x4b5   :  { %v141_v63 = vld [vmem:[%s5717_s3 + $0x10] sm:$0xff] }
 0x4ba   :  { %v628_v0 = vpop.f32.mrb[10].mxu1 }
 0x4bb   :  { %v4486_v1 = vpop.f32.mrb[11].mxu1  ;;  %v635_v2 = vsel %vm148_vm2, %v628_v0, -inf }
 0x4bc   :  { %636 = vmax.xlane.f32.xlu0 %v635_v2 }
 0x4d2   :  { %730 = vrot.lane.b32.xlu0 %v5119_v25, %s5011_s22 }
 0x4d6   :  { %968 = vrot.lane.b32.xlu0 %v5126_v27, %s5012_s23 }
 0x4da   :  { %1046 = vrot.lane.b32.xlu0 %v5134_v29, %s5012_s23 }
 0x549   :  { %v637_v4 = vpop.xlane.xlu0 %636 }
 0x54a   :  { %v639_v5 = vsub.f32 %v628_v0, %v637_v4 }
 0x54c   :  { %v642_v6 = vmul.f32 1.442695, %v639_v5 }
 0x54d   :  { %v731_v7 = vpop.permute.xlu0 %730 }
 0x54e   :  { %4908 = vpow2.f32 %v642_v6  ;;  %4493 = vmatpush3.msra.mxu1 %v731_v7 }
 0x54f   :  { %4507 = vmatprep.subr.mxu1 %v5004_v18 }
 0x551   :  { %v969_v22 = vpop.permute.xlu0 %968 }
 0x555   :  { %v1047_v26 = vpop.permute.xlu0 %1046 }
 0x558   :  { %v4909_v8 = vpop.eup %4908 }
 0x559   :  { %v647_v11 = vsel %vm148_vm2, %v4909_v8, 0.0 }
 0x55a   :  { %648 = vadd.xlane.f32.xlu1 %v647_v11 }
 0x56b   :  { %1048 = vrot.lane.b32.xlu1 %v5119_v25, %s5010_s21 }
 0x58f   :  { %633 = vmax.xlane.f32.xlu1 %v632_v12 }
 0x5e7   :  { %v649_v14 = vpop.xlane.xlu1 %648 }
 0x5e8   :  { %4910 = vrcp.f32 %v649_v14 }
 0x5eb   :  { %v1049_v23 = vpop.permute.xlu1 %1048 }
 0x5f2   :  { %v4911_v16 = vpop.eup %4910 }
 0x5f3   :  { %v653_v21 = vmul.f32 %v4911_v16, %v4909_v8 }
 0x5f5   :  { %4495 = vmatmul.mubr.msk.f32.vlgmr.msra.gmra.mrb[12].mxu1 %vm148_vm2, %v653_v21 }
 0x5f6   :  { %4508 = vmatpush3.xpose.msk.msra.mxu1 %vm148_vm2, %v971_v13  ;;  %4509 = vmatprep.mubr.msk.f32.mxu1 %vm5005_vm1, %v5004_v18 }
 0x5f7   :  { %4512 = vmatprep.subr.mxu1 %v5004_v18 }
 0x5f9   :  { %4510 = vmatmul.mubr.msk.f32.vlgmr.msra.gmra.mrb[14].mxu1 %vm148_vm2, %v969_v22 }
 0x5fa   :  { %4513 = vmatpush3.xpose.msk.msra.mxu1 %vm148_vm2, %v1049_v23  ;;  %4514 = vmatprep.mubr.msk.f32.mxu1 %vm5005_vm1, %v5004_v18 }
 0x5fb   :  { %4522 = vmatprep.subr.mxu1 %v5004_v18 }
 0x5fd   :  { %4515 = vmatmul.mubr.msk.f32.vlgmr.msra.gmra.mrb[16].mxu1 %vm148_vm2, %v1047_v26 }
 0x5fe   :  { %4524 = vmatprep.mubr.msk.f32.mxu1 %vm5005_vm1, %v5004_v18 }
 0x61c   :  { %v634_v28 = vpop.xlane.xlu1 %633 }
 0x61d   :  { %v638_v30 = vsub.f32 %v550_v60, %v634_v28 }
 0x61f   :  { %v640_v31 = vmul.f32 1.442695, %v638_v30 }
 0x621   :  { %4912 = vpow2.f32 %v640_v31 }
 0x62b   :  { %v4913_v32 = vpop.eup %4912 }
 0x62c   :  { %v644_v33 = vsel %vm148_vm2, %v4913_v32, 0.0 }
 0x62d   :  { %645 = vadd.xlane.f32.xlu0 %v644_v33 }
 0x643   :  { %654 = vrot.lane.b32.xlu0 %v5115_v24, %s5011_s22 }
 0x647   :  { %1222 = vrot.lane.b32.xlu0 %v5119_v25, %s5013_s24 }
 0x64b   :  { %1383 = vrot.lane.b32.xlu0 %v5115_v24, %s5014_s25 }
 0x64f   :  { %1461 = vrot.lane.b32.xlu0 %v5119_v25, %s5014_s25 }
 0x653   :  { %1381 = vrot.lane.b32.xlu0 %v5126_v27, %s5015_s26 }
 0x6ba   :  { %v646_v34 = vpop.xlane.xlu0 %645 }
 0x6bb   :  { %4914 = vrcp.f32 %v646_v34 }
 0x6be   :  { %v655_v35 = vpop.permute.xlu0 %654 }
 0x6bf   :  { %4488 = vmatpush3.msra.mxu0 %v655_v35 }
 0x6c0   :  { %4497 = vmatprep.subr.mxu0 %v140_v46 }
 0x6c2   :  { %v1223_v36 = vpop.permute.xlu0 %1222 }
 0x6c3   :  { %4523 = vmatpush3.msra.mxu1 %v1223_v36 }
 0x6c4   :  { %4532 = vmatprep.subr.mxu1 %v5004_v18 }
 0x6c5   :  { %v4915_v37 = vpop.eup %4914 }
 0x6c6   :  { %v652_v38 = vmul.f32 %v4915_v37, %v4913_v32  ;;  %v1384_v1 = vpop.permute.xlu0 %1383 }
 0x6c8   :  { %4490 = vmatmul.mubr.msk.f32.vlgmr.msra.gmra.mrb[2].mxu0 %vm148_vm2, %v652_v38  ;;  %v802_v39 = vpop.f32.mrb[12].mxu1 }
 0x6c9   :  { %v4496_v40 = vpop.f32.mrb[13].mxu1  ;;  %4498 = vmatpush3.msra.mxu0 %v140_v46 }
 0x6ca   :  { %4502 = vmatprep.subr.mxu0 %v139_v47  ;;  %v1462_v4 = vpop.permute.xlu0 %1461 }
 0x6cc   :  { %v1042_v41 = vpop.f32.mrb[14].mxu1 }
 0x6cd   :  { %v4511_v42 = vpop.f32.mrb[15].mxu1  ;;  %v1124_v43 = vsel %vm148_vm2, %v1042_v41, -inf }
 0x6ce   :  { %1125 = vmax.xlane.f32.xlu1 %v1124_v43  ;;  %v1382_v6 = vpop.permute.xlu0 %1381  ;;  %v142_v43 = vld [vmem:[%s5717_s3 + $0x18] sm:$0xff] }
 0x6d0   :  { %v1120_v27 = vpop.f32.mrb[16].mxu1 }
 0x6d1   :  { %v4516_v44 = vpop.f32.mrb[17].mxu1  ;;  %v1127_v45 = vsel %vm148_vm2, %v1120_v27, -inf }
 0x6d2   :  { %1128 = vmax.xlane.f32.xlu1 %v1127_v45 }
 0x75b   :  { %v1126_v48 = vpop.xlane.xlu1 %1125 }
 0x75c   :  { %v1130_v49 = vsub.f32 %v1042_v41, %v1126_v48 }
 0x75e   :  { %v1132_v50 = vmul.f32 1.442695, %v1130_v49  ;;  %v1797_v49 = vrot.slane %v5110_v20, %v5082_v9 }
 0x75f   :  { %v1129_v51 = vpop.xlane.xlu1 %1128 }
 0x760   :  { %4916 = vpow2.f32 %v1132_v50  ;;  %v1131_v52 = vsub.f32 %v1120_v27, %v1129_v51 }
 0x762   :  { %v1134_v53 = vmul.f32 1.442695, %v1131_v52 }
 0x764   :  { %4918 = vpow2.f32 %v1134_v53 }
 0x76a   :  { %v4917_v54 = vpop.eup %4916 }
 0x76b   :  { %v1136_v55 = vsel %vm148_vm2, %v4917_v54, 0.0 }
 0x76c   :  { %1137 = vadd.xlane.f32.xlu1 %v1136_v55 }
 0x76e   :  { %v4919_v56 = vpop.eup %4918 }
 0x76f   :  { %v1139_v57 = vsel %vm148_vm2, %v4919_v56, 0.0 }
 0x770   :  { %1140 = vadd.xlane.f32.xlu1 %v1139_v57 }
 0x781   :  { %1146 = vrot.lane.b32.xlu1 %v5115_v24, %s5013_s24 }
 0x785   :  { %1459 = vrot.lane.b32.xlu1 %v5134_v29, %s5015_s26 }
 0x79b   :  { %v726_v59 = vpop.f32.mrb[2].mxu0 }
 0x79c   :  { %v4491_v60 = vpop.f32.mrb[3].mxu0  ;;  %4499 = vmatprep.mubr.msk.f32.mxu0 %vm148_vm2, %v726_v59 }
 0x79d   :  { %4500 = vmatmul.mubr.msk.f32.vlgmr.msra.gmra.mrb[4].mxu0 %vm148_vm2, %v802_v39 }
 0x79e   :  { %4504 = vmatprep.mubr.msk.f32.mxu0 %vm148_vm2, %v5177_v58  ;;  %4503 = vmatpush3.msra.mxu0 %v139_v47 }
 0x79f   :  { %4517 = vmatprep.subr.mxu0 %v5004_v18 }
 0x7a5   :  { %4505 = vmatmul.mubr.msk.f32.vlgmr.msra.gmra.mrb[4].mxu0 %vm148_vm2, %v5179_v62 }
 0x7a6   :  { %4519 = vmatprep.mubr.msk.f32.mxu0 %vm5005_vm1, %v5004_v18 }
 0x7f9   :  { %v1138_v61 = vpop.xlane.xlu1 %1137 }
 0x7fa   :  { %4920 = vrcp.f32 %v1138_v61 }
 0x7fd   :  { %v1141_v29 = vpop.xlane.xlu1 %1140 }
 0x7fe   :  { %4922 = vrcp.f32 %v1141_v29 }
 0x801   :  { %v1147_v0 = vpop.permute.xlu1 %1146 }
 0x802   :  { %4518 = vmatpush3.msra.mxu0 %v1147_v0 }
 0x803   :  { %4527 = vmatprep.subr.mxu0 %v141_v63 }
 0x804   :  { %v4921_v58 = vpop.eup %4920 }
 0x805   :  { %v1144_v2 = vmul.f32 %v4921_v58, %v4917_v54  ;;  %v1460_v13 = vpop.permute.xlu1 %1459 }
 0x807   :  { %4520 = vmatmul.mubr.msk.f32.vlgmr.msra.gmra.mrb[6].mxu0 %vm148_vm2, %v1144_v2  ;;  %v1841_v2 = vld [vmem:[%s5718_s4] sm:$0xff] }
 0x808   :  { %v4923_v62 = vpop.eup %4922  ;;  %4528 = vmatpush3.msra.mxu0 %v141_v63 }
 0x809   :  { %v1145_v5 = vmul.f32 %v4923_v62, %v4919_v56  ;;  %4537 = vmatprep.subr.mxu0 %v5004_v18  ;;  %v1842_v62 = vld [vmem:[%s5718_s4 + $0x8] sm:$0xff] }
 0x80b   :  { %4525 = vmatmul.mubr.msk.f32.vlgmr.msra.gmra.mrb[18].mxu1 %vm148_vm2, %v1145_v5  ;;  %v1843_v5 = vld [vmem:[%s5718_s4 + $0x10] sm:$0xff] }
 0x80c   :  { %4533 = vmatpush3.xpose.msk.msra.mxu1 %vm148_vm2, %v1384_v1  ;;  %4534 = vmatprep.mubr.msk.f32.mxu1 %vm5005_vm1, %v5004_v18 }
 0x80d   :  { %4542 = vmatprep.subr.mxu1 %v5004_v18 }
 0x80f   :  { %4535 = vmatmul.mubr.msk.f32.vlgmr.msra.gmra.mrb[20].mxu1 %vm148_vm2, %v1382_v6  ;;  %v1844_v6 = vld [vmem:[%s5718_s4 + $0x18] sm:$0xff] }
 0x810   :  { %4544 = vmatprep.mubr.msk.f32.mxu1 %vm5005_vm1, %v5004_v18 }
 0x8da   :  { %v1218_v7 = vpop.f32.mrb[6].mxu0 }
 0x8db   :  { %v4521_v8 = vpop.f32.mrb[7].mxu0  ;;  %4529 = vmatprep.mubr.msk.f32.mxu0 %vm148_vm2, %v1218_v7  ;;  %v4783_v7 = vpack.c.bf16 %v1844_v6, %v1843_v5 }
 0x8dc   :  { %v1932_v8 = vld [vmem:[%s5719_s5] sm:$0xff] }
 0x8de   :  { %v1294_v11 = vpop.f32.mrb[18].mxu1 }
 0x8df   :  { %v4526_v12 = vpop.f32.mrb[19].mxu1  ;;  %4530 = vmatmul.mubr.msk.f32.vlgmr.msra.gmra.mrb[4].mxu0 %vm148_vm2, %v1294_v11  ;;  %v1933_v11 = vld [vmem:[%s5719_s5 + $0x8] sm:$0xff] }
 0x8e0   :  { %4538 = vmatpush3.xpose.msk.msra.mxu0 %vm148_vm2, %v1462_v4  ;;  %4539 = vmatprep.mubr.msk.f32.mxu0 %vm5005_vm1, %v5004_v18  ;;  %v4779_v4 = vpack.c.bf16 %v1842_v62, %v1841_v2  ;;  %v1934_v12 = vld [vmem:[%s5719_s5 + $0x10] sm:$0xff] }
 0x8e1   :  { %4547 = vmatprep.subr.mxu0 %v5004_v18 }
 0x8e2   :  { %v1455_v14 = vpop.f32.mrb[20].mxu1 }
 0x8e3   :  { %v4536_v16 = vpop.f32.mrb[21].mxu1  ;;  %4540 = vmatmul.mubr.msk.f32.vlgmr.msra.gmra.mrb[8].mxu0 %vm148_vm2, %v1460_v13  ;;  %v1537_v21 = vsel %vm148_vm2, %v1455_v14, -inf  ;;  %v4787_v13 = vpack.c.bf16 %v1933_v11, %v1932_v8 }
 0x8e4   :  { %1538 = vmax.xlane.f32.xlu0 %v1537_v21  ;;  %4549 = vmatprep.mubr.msk.f32.mxu0 %vm5005_vm1, %v5004_v18  ;;  %v1936_v21 = vld [vmem:[%s5719_s5 + $0x20] sm:$0xff] }
 0x971   :  { %v1539_v22 = vpop.xlane.xlu0 %1538 }
 0x972   :  { %v1543_v23 = vsub.f32 %v1455_v14, %v1539_v22  ;;  %v1935_v14 = vld [vmem:[%s5719_s5 + $0x18] sm:$0xff]  ;;  %v1937_v22 = vld [vmem:[%s5719_s5 + $0x28] sm:$0xff] }
 0x973   :  { %v4791_v16 = vpack.c.bf16 %v1935_v14, %v1934_v12 }
 0x974   :  { %v1545_v26 = vmul.f32 1.442695, %v1543_v23  ;;  %v4795_v23 = vpack.c.bf16 %v1937_v22, %v1936_v21 }
 0x976   :  { %4924 = vpow2.f32 %v1545_v26  ;;  %v1938_v26 = vld [vmem:[%s5719_s5 + $0x30] sm:$0xff] }
 0x980   :  { %v4925_v28 = vpop.eup %4924 }
 0x981   :  { %v1549_v30 = vsel %vm148_vm2, %v4925_v28, 0.0 }
 0x982   :  { %1550 = vadd.xlane.f32.xlu0 %v1549_v30 }
 0x9b6   :  { %v1533_v31 = vpop.f32.mrb[8].mxu0 }
 0x9b7   :  { %v4541_v32 = vpop.f32.mrb[9].mxu0  ;;  %v1540_v33 = vsel %vm148_vm2, %v1533_v31, -inf }
 0x9b8   :  { %1541 = vmax.xlane.f32.xlu1 %v1540_v33  ;;  %v1941_v32 = vld [vmem:[%s5719_s5 + $0x48] sm:$0xff] }
 0x9c9   :  { %1559 = vrot.lane.b32.xlu1 %v5115_v24, %s5016_s11 }
 0xa0f   :  { %v1551_v34 = vpop.xlane.xlu0 %1550 }
 0xa10   :  { %4926 = vrcp.f32 %v1551_v34  ;;  %v1942_v34 = vld [vmem:[%s5719_s5 + $0x50] sm:$0xff] }
 0xa1a   :  { %v4927_v36 = vpop.eup %4926 }
 0xa1b   :  { %v1557_v39 = vmul.f32 %v4927_v36, %v4925_v28  ;;  %v1939_v28 = vld [vmem:[%s5719_s5 + $0x38] sm:$0xff] }
 0xa1c   :  { %v4799_v30 = vpack.c.bf16 %v1939_v28, %v1938_v26 }
 0xa45   :  { %v1542_v35 = vpop.xlane.xlu1 %1541 }
 0xa46   :  { %v1544_v37 = vsub.f32 %v1533_v31, %v1542_v35  ;;  %v1940_v31 = vld [vmem:[%s5719_s5 + $0x40] sm:$0xff]  ;;  %v1943_v35 = vld [vmem:[%s5719_s5 + $0x58] sm:$0xff] }
 0xa47   :  { %v4803_v33 = vpack.c.bf16 %v1941_v32, %v1940_v31  ;;  %v4807_v36 = vpack.c.bf16 %v1943_v35, %v1942_v34  ;;  %v4228_v31 = vld [vmem:[%s5716_s2 + $0x28] sm:$0xff]  ;;  %v4230_v34 = vld [vmem:[%s5716_s2 + $0x38] sm:$0xff] }
 0xa48   :  { %v1547_v38 = vmul.f32 1.442695, %v1544_v37  ;;  %v1944_v37 = vld [vmem:[%s5719_s5 + $0x60] sm:$0xff] }
 0xa49   :  { %v1560_v40 = vpop.permute.xlu1 %1559 }
 0xa4a   :  { %4928 = vpow2.f32 %v1547_v38  ;;  %4543 = vmatpush3.msra.mxu1 %v1560_v40  ;;  %v1945_v38 = vld [vmem:[%s5719_s5 + $0x68] sm:$0xff] }
 0xa4b   :  { %4545 = vmatmul.mubr.msk.f32.vlgmr.msra.gmra.mrb[22].mxu1 %vm148_vm2, %v1557_v39  ;;  %4780 = vmatprep.subr.bf16.mxu1 %v4779_v4  ;;  %v4811_v39 = vpack.c.bf16 %v1945_v38, %v1944_v37 }
 0xa4c   :  { %4782 = vmatpush3.bf16.msra.mxu1 %v4779_v4 }
 0xa4d   :  { %4784 = vmatprep.subr.bf16.mxu1 %v4783_v7 }
 0xa50   :  { %4786 = vmatpush3.bf16.msra.mxu1 %v4783_v7 }
 0xa54   :  { %v4929_v41 = vpop.eup %4928 }
 0xa55   :  { %v1552_v42 = vsel %vm148_vm2, %v4929_v41, 0.0 }
 0xa56   :  { %1553 = vadd.xlane.f32.xlu0 %v1552_v42 }
 0xa6c   :  { %1635 = vrot.lane.b32.xlu0 %v5119_v25, %s5016_s11 }
 0xae3   :  { %v1554_v24 = vpop.xlane.xlu0 %1553 }
 0xae4   :  { %4930 = vrcp.f32 %v1554_v24 }
 0xae7   :  { %v1636_v27 = vpop.permute.xlu0 %1635 }
 0xae8   :  { %4548 = vmatpush3.msra.mxu0 %v1636_v27 }
 0xae9   :  { %4552 = vmatprep.subr.mxu0 %v142_v43 }
 0xaee   :  { %v4931_v44 = vpop.eup %4930 }
 0xaef   :  { %v1558_v45 = vmul.f32 %v4931_v44, %v4929_v41  ;;  %v1837_v44 = vsub.s32 2, %v5070_v3 }
 0xaf1   :  { %4550 = vmatmul.mubr.msk.f32.vlgmr.msra.gmra.mrb[10].mxu0 %vm148_vm2, %v1558_v45  ;;  %v1832_v45 = vrot.slane %v5110_v20, %v5085_v10 }
 0xaf2   :  { %4553 = vmatpush3.msra.mxu0 %v142_v43 }
 0xaf3   :  { %4788 = vmatprep.subr.bf16.mxu0 %v4787_v13 }
 0xb1e   :  { %v1631_v46 = vpop.f32.mrb[22].mxu1 }
 0xb1f   :  { %v4546_v47 = vpop.f32.mrb[23].mxu1  ;;  %4554 = vmatprep.mubr.msk.f32.mxu0 %vm148_vm2, %v1631_v46 }
 0xbc4   :  { %v1707_v48 = vpop.f32.mrb[10].mxu0 }
 0xbc5   :  { %v4551_v25 = vpop.f32.mrb[11].mxu0  ;;  %4555 = vmatmul.mubr.msk.f32.vlgmr.msra.gmra.mrb[4].mxu0 %vm148_vm2, %v1707_v48 }
 0xbc6   :  { %4790 = vmatpush3.bf16.msra.mxu0 %v4787_v13 }
 0xbc7   :  { %4792 = vmatprep.subr.bf16.mxu0 %v4791_v16 }
 0xbca   :  { %4794 = vmatpush3.bf16.msra.mxu0 %v4791_v16 }
 0xbcb   :  { %4796 = vmatprep.subr.bf16.mxu0 %v4795_v23 }
 0xbce   :  { %4798 = vmatpush3.bf16.msra.mxu0 %v4795_v23 }
 0xbcf   :  { %4800 = vmatprep.subr.bf16.mxu0 %v4799_v30 }
 0xbd2   :  { %4802 = vmatpush3.bf16.msra.mxu0 %v4799_v30  ;;  %v4227_v30 = vld [vmem:[%s5716_s2 + $0x20] sm:$0xff] }
 0xbd3   :  { %4804 = vmatprep.subr.bf16.mxu0 %v4803_v33  ;;  %v4819_v32 = vpack.c.bf16 %v4228_v31, %v4227_v30 }
 0xbd5   :  { %4820 = vmatprep.subr.bf16.mxu1 %v4819_v32 }
 0xbd6   :  { %4806 = vmatpush3.bf16.msra.mxu0 %v4803_v33  ;;  %v4229_v33 = vld [vmem:[%s5716_s2 + $0x30] sm:$0xff] }
 0xbd7   :  { %4808 = vmatprep.subr.bf16.mxu0 %v4807_v36  ;;  %v4823_v35 = vpack.c.bf16 %v4230_v34, %v4229_v33 }
 0xbda   :  { %4810 = vmatpush3.bf16.msra.mxu0 %v4807_v36 }
 0xbdb   :  { %4812 = vmatprep.subr.bf16.mxu0 %v4811_v39 }
 0xbde   :  { %4814 = vmatpush3.bf16.msra.mxu0 %v4811_v39 }
 0xc98   :  { %v4556_v50 = vpop.f32.mrb[4].mxu0 }
 0xc99   :  { %v1799_v51 = vadd.f32 %v4556_v50, %v1797_v49  ;;  %v1783_v52 = vpop.f32.mrb[5].mxu0 }
 0xc9a   :  { %v1798_v53 = vadd.f32 %v1797_v49, %v1783_v52  ;;  %v1838_v49 = vrot.slane %v5110_v20, %v1837_v44 }
 0xc9b   :  { %v1801_v54 = vadd.f32 %v1799_v51, %v5096_v17 }
 0xc9c   :  { %v1800_v55 = vadd.f32 %v1798_v53, %v5092_v15 }
 0xc9d   :  { %v1805_v56 = vsel %vm57_vm0, %v1801_v54, 0.0 }
 0xc9e   :  { %1806 = vadd.xlane.f32.xlu0 %v1805_v56  ;;  %v1802_v57 = vsel %vm57_vm0, %v1800_v55, 0.0 }
 0xc9f   :  { %1803 = vadd.xlane.f32.xlu1 %v1802_v57  ;;  %v1847_v57 = vsub.s32 7, %v5070_v3 }
 0xd2b   :  { %v1807_v59 = vpop.xlane.xlu0 %1806 }
 0xd2c   :  { %v1810_v60 = vmul.f32 0.03125, %v1807_v59  ;;  %v1804_v61 = vpop.xlane.xlu1 %1803  ;;  %v1848_v59 = vrot.slane %v5110_v20, %v1847_v57 }
 0xd2d   :  { %v1809_v29 = vmul.f32 0.03125, %v1804_v61 }
 0xd2e   :  { %v5285_v63 = vsub.f32 %v1801_v54, %v1810_v60  ;;  %v1946_v54 = vld [vmem:[%s5719_s5 + $0x70] sm:$0xff] }
 0xd2f   :  { %v5287_v0 = vsub.f32 %v1800_v55, %v1809_v29  ;;  %v1947_v55 = vld [vmem:[%s5719_s5 + $0x78] sm:$0xff] }
 0xd30   :  { %v1814_v1 = vmul.f32 %v5285_v63, %v5285_v63  ;;  %v4815_v56 = vpack.c.bf16 %v1947_v55, %v1946_v54 }
 0xd31   :  { %v1813_v15 = vmul.f32 %v5287_v0, %v5287_v0 }
 0xd32   :  { %v1818_v17 = vsel %vm57_vm0, %v1814_v1, 0.0  ;;  %4816 = vmatprep.subr.bf16.mxu0 %v4815_v56 }
 0xd33   :  { %1819 = vadd.xlane.f32.xlu0 %v1818_v17  ;;  %v1815_v58 = vsel %vm57_vm0, %v1813_v15, 0.0  ;;  %4818 = vmatpush3.bf16.msra.mxu0 %v4815_v56  ;;  %v1950_v15 = vsub.s32 5, %v5070_v3 }
 0xd34   :  { %1816 = vadd.xlane.f32.xlu1 %v1815_v58  ;;  %4644 = vmatprep.subr.mxu0 %v5004_v18 }
 0xd35   :  { %v1951_v17 = vrot.slane %v5110_v20, %v1950_v15 }
 0xdc0   :  { %v1820_v40 = vpop.xlane.xlu0 %1819 }
 0xdc1   :  { %v1822_v41 = vmul.f32 0.03125, %v1820_v40  ;;  %v1817_v42 = vpop.xlane.xlu1 %1816 }
 0xdc2   :  { %v1821_v24 = vmul.f32 0.03125, %v1817_v42  ;;  %v2057_v42 = vsub.s32 3, %v5070_v3 }
 0xdc3   :  { %v1824_v43 = vadd.f32 1e-05, %v1822_v41 }
 0xdc4   :  { %v1823_v27 = vadd.f32 1e-05, %v1821_v24  ;;  %v2063_v24 = vsub.s32 4, %v5070_v3 }
 0xdc5   :  { %4932 = vrsqrt.f32 %v1824_v43  ;;  %v2058_v43 = vrot.slane %v5110_v20, %v2057_v42 }
 0xdc6   :  { %4934 = vrsqrt.f32 %v1823_v27 }
 0xdcf   :  { %v4933_v46 = vpop.eup %4932 }
 0xdd0   :  { %v4935_v47 = vpop.eup %4934  ;;  %v1828_v48 = vmul.f32 %v4933_v46, %v5285_v63 }
 0xdd1   :  { %v1827_v25 = vmul.f32 %v4935_v47, %v5287_v0 }
 0xdd2   :  { %v1834_v50 = vmul.f32 %v1832_v45, %v1828_v48  ;;  %v2064_v48 = vrot.slane %v5110_v20, %v2063_v24 }
 0xdd3   :  { %v1833_v51 = vmul.f32 %v1832_v45, %v1827_v25 }
 0xdd4   :  { %v1840_v53 = vadd.f32 %v1838_v49, %v1834_v50 }
 0xdd5   :  { %v1839_v52 = vadd.f32 %v1838_v49, %v1833_v51 }
 0xdd7   :  { %4565 = vmatprep.mubr.msk.f32.mxu1 %vm57_vm0, %v1839_v52 }
 0xdd8   :  { %4566 = vmatmul.mubr.msk.f32.vlgmr.msra.gmra.mrb[24].mxu1 %vm57_vm0, %v1840_v53 }
 0xdd9   :  { %4822 = vmatpush3.bf16.msra.mxu1 %v4819_v32 }
 0xdda   :  { %4824 = vmatprep.subr.bf16.mxu1 %v4823_v35 }
 0xddd   :  { %4826 = vmatpush3.bf16.msra.mxu1 %v4823_v35 }
 0xdde   :  { %4614 = vmatprep.subr.mxu1 %v5004_v18 }
 0xeab   :  { %v4567_v60 = vpop.f32.mrb[24].mxu1 }
 0xeac   :  { %v1927_v61 = vadd.f32 %v4567_v60, %v1848_v59  ;;  %v1921_v29 = vpop.f32.mrb[25].mxu1 }
 0xead   :  { %v1922_v63 = vadd.f32 %v1921_v29, %v1848_v59 }
 0xeae   :  { %v1931_v1 = vmax.f32 %v1927_v61, 0.0 }
 0xeaf   :  { %v1930_v0 = vmax.f32 %v1922_v63, 0.0 }
 0xeb1   :  { %4600 = vmatprep.mubr.f32.mxu0 %v1930_v0 }
 0xeb2   :  { %4601 = vmatmul.mubr.f32.vlgmr.msra.gmra.mrb[12].mxu0 %v1931_v1 }
 0xeb3   :  { %4646 = vmatprep.mubr.msk.f32.mxu0 %vm5005_vm1, %v5004_v18 }
 0xf85   :  { %v4602_v58 = vpop.f32.mrb[12].mxu0 }
 0xf86   :  { %v2024_v2 = vadd.f32 %v4602_v58, %v1951_v17  ;;  %v2018_v62 = vpop.f32.mrb[13].mxu0 }
 0xf87   :  { %v2019_v4 = vadd.f32 %v2018_v62, %v1951_v17 }
 0xf88   :  { %v2028_v5 = vadd.f32 %v2024_v2, %v1840_v53 }
 0xf89   :  { %v2027_v6 = vadd.f32 %v2019_v4, %v1839_v52  ;;  %v5414_v52 = vld [vmem:[%s5720_s6 + $0x8] sm:$0xff] }
 0xf8a   :  { %v2032_v7 = vsel %vm57_vm0, %v2028_v5, 0.0  ;;  %v2077_v20 = vrot.slane %v5414_v52, %v55_v19 }
 0xf8b   :  { %2033 = vadd.xlane.f32.xlu0 %v2032_v7  ;;  %v2029_v8 = vsel %vm57_vm0, %v2027_v6, 0.0 }
 0xf8c   :  { %2030 = vadd.xlane.f32.xlu1 %v2029_v8 }
0x1018   :  { %v2034_v11 = vpop.xlane.xlu0 %2033 }
0x1019   :  { %v2036_v12 = vmul.f32 0.03125, %v2034_v11  ;;  %v2031_v13 = vpop.xlane.xlu1 %2030 }
0x101a   :  { %v2035_v14 = vmul.f32 0.03125, %v2031_v13 }
0x101b   :  { %v2038_v16 = vsub.f32 %v2028_v5, %v2036_v12 }
0x101c   :  { %v2037_v21 = vsub.f32 %v2027_v6, %v2035_v14 }
0x101d   :  { %v2040_v22 = vmul.f32 %v2038_v16, %v2038_v16 }
0x101e   :  { %v2039_v23 = vmul.f32 %v2037_v21, %v2037_v21 }
0x101f   :  { %v2044_v26 = vsel %vm57_vm0, %v2040_v22, 0.0 }
0x1020   :  { %2045 = vadd.xlane.f32.xlu0 %v2044_v26  ;;  %v2041_v28 = vsel %vm57_vm0, %v2039_v23, 0.0 }
0x1021   :  { %2042 = vadd.xlane.f32.xlu1 %v2041_v28 }
0x10ad   :  { %v2046_v36 = vpop.xlane.xlu0 %2045 }
0x10ae   :  { %v2048_v37 = vmul.f32 0.03125, %v2046_v36  ;;  %v2043_v38 = vpop.xlane.xlu1 %2042 }
0x10af   :  { %v2047_v39 = vmul.f32 0.03125, %v2043_v38 }
0x10b0   :  { %v2050_v40 = vadd.f32 1e-05, %v2048_v37 }
0x10b1   :  { %v2049_v41 = vadd.f32 1e-05, %v2047_v39 }
0x10b2   :  { %4936 = vrsqrt.f32 %v2050_v40 }
0x10b3   :  { %4938 = vrsqrt.f32 %v2049_v41 }
0x10bc   :  { %v4937_v27 = vpop.eup %4936 }
0x10bd   :  { %v4939_v45 = vpop.eup %4938  ;;  %v2054_v46 = vmul.f32 %v4937_v27, %v2038_v16 }
0x10be   :  { %v2053_v47 = vmul.f32 %v4939_v45, %v2037_v21 }
0x10bf   :  { %v2060_v25 = vmul.f32 %v2058_v43, %v2054_v46 }
0x10c0   :  { %v2059_v49 = vmul.f32 %v2058_v43, %v2053_v47 }
0x10c1   :  { %v5403_v51 = vadd.f32 %v2064_v48, %v2060_v25 }
0x10c2   :  { %v5401_v50 = vadd.f32 %v2064_v48, %v2059_v49 }
0x10c4   :  { %4611 = vmatprep.mubr.msk.f32.mxu1 %vm57_vm0, %v5401_v50 }
0x10c5   :  { %4612 = vmatmul.mubr.msk.f32.vlgmr.msra.gmra.mrb[26].mxu1 %vm57_vm0, %v5403_v51 }
0x10c6   :  { %4616 = vmatprep.mubr.msk.f32.mxu1 %vm5005_vm1, %v5004_v18 }
0x1198   :  { %v4613_v53 = vpop.f32.mrb[26].mxu1 }
0x1199   :  { %v5419_v54 = vadd.f32 %v4613_v53, %v2077_v20  ;;  %v2150_v55 = vpop.f32.mrb[27].mxu1 }
0x119a   :  { %v5421_v56 = vadd.f32 %v2150_v55, %v2077_v20 }
0x119b   :  { %2245 = vrot.lane.b32.xlu0 %v5419_v54, %s5006_s17  ;;  %v5438_v61 = vmul.f32 0.35355338, %v5419_v54 }
0x119c   :  { %2167 = vrot.lane.b32.xlu1 %v5421_v56, %s5006_s17  ;;  %v5429_v60 = vmul.f32 0.35355338, %v5421_v56  ;;  %s5018_s17 = smov [#allocation2]  }
0x120d   :  { %v2246_v19 = vpop.permute.xlu0 %2245 }
0x120e   :  { %v2168_v59 = vpop.permute.xlu1 %2167 }
0x120f   :  { %4615 = vmatpush3.xpose.msk.msra.mxu1 %vm148_vm2, %v2168_v59 }
0x1210   :  { %4619 = vmatprep.subr.mxu1 %v5004_v18 }
0x1212   :  { %4617 = vmatmul.mubr.msk.f32.vlgmr.msra.gmra.mrb[28].mxu1 %vm148_vm2, %v5429_v60 }
0x1213   :  { %4620 = vmatpush3.xpose.msk.msra.mxu1 %vm148_vm2, %v2246_v19  ;;  %4621 = vmatprep.mubr.msk.f32.mxu1 %vm5005_vm1, %v5004_v18 }
0x1214   :  { %4624 = vmatprep.subr.mxu1 %v5004_v18 }
0x1216   :  { %4622 = vmatmul.mubr.msk.f32.vlgmr.msra.gmra.mrb[30].mxu1 %vm148_vm2, %v5438_v61 }
0x1217   :  { %4626 = vmatprep.mubr.msk.f32.mxu1 %vm5005_vm1, %v5004_v18 }
0x12e5   :  { %v2240_v29 = vpop.f32.mrb[28].mxu1 }
0x12e6   :  { %v4618_v63 = vpop.f32.mrb[29].mxu1  ;;  %v2322_v0 = vsel %vm148_vm2, %v2240_v29, -inf }
0x12e7   :  { %2323 = vmax.xlane.f32.xlu1 %v2322_v0 }
0x12e9   :  { %v2318_v1 = vpop.f32.mrb[30].mxu1 }
0x12ea   :  { %v4623_v17 = vpop.f32.mrb[31].mxu1  ;;  %v2325_v58 = vsel %vm148_vm2, %v2318_v1, -inf }
0x12eb   :  { %2326 = vmax.xlane.f32.xlu0 %v2325_v58 }
0x12f8   :  { %2344 = vrot.lane.b32.xlu1 %v5421_v56, %s5007_s18 }
0x1374   :  { %v2324_v2 = vpop.xlane.xlu1 %2323 }
0x1375   :  { %v2328_v62 = vsub.f32 %v2240_v29, %v2324_v2 }
0x1377   :  { %v2330_v4 = vmul.f32 1.442695, %v2328_v62 }
0x1378   :  { %v2345_v5 = vpop.permute.xlu1 %2344  ;;  %v2327_v6 = vpop.xlane.xlu0 %2326 }
0x1379   :  { %4940 = vpow2.f32 %v2330_v4  ;;  %v2329_v7 = vsub.f32 %v2318_v1, %v2327_v6  ;;  %4625 = vmatpush3.msra.mxu1 %v2345_v5 }
0x137a   :  { %4629 = vmatprep.subr.mxu1 %v5004_v18 }
0x137b   :  { %v2332_v8 = vmul.f32 1.442695, %v2329_v7 }
0x137d   :  { %4942 = vpow2.f32 %v2332_v8 }
0x1383   :  { %v4941_v11 = vpop.eup %4940 }
0x1384   :  { %v2334_v12 = vsel %vm148_vm2, %v4941_v11, 0.0 }
0x1385   :  { %2335 = vadd.xlane.f32.xlu1 %v2334_v12 }
0x1387   :  { %v4943_v13 = vpop.eup %4942 }
0x1388   :  { %v2337_v14 = vsel %vm148_vm2, %v4943_v13, 0.0 }
0x1389   :  { %2338 = vadd.xlane.f32.xlu0 %v2337_v14 }
0x1396   :  { %2498 = vrot.lane.b32.xlu1 %v5421_v56, %s5008_s19 }
0x139a   :  { %2496 = vrot.lane.b32.xlu1 %v5429_v60, %s5009_s20 }
0x139e   :  { %2574 = vrot.lane.b32.xlu1 %v5438_v61, %s5009_s20 }
0x139f   :  { %2420 = vrot.lane.b32.xlu0 %v5419_v54, %s5007_s18  ;;  %s4182_s18 = sshll.u32 %s5018_s17, 4  ;;  %s4183_s18 = int_to_ptr.vmem [resolvable:$true] %s4182_s18 }
0x13a0   :  { %p4985_p1 = scmp.lt.s32.totalorder %s4183_s18, %s4183_s18 }
0x13a2   :  { %2990 = vrot.lane.b32.xlu1 %v5421_v56, %s5010_s21 }
0x13a3   :  { %2576 = vrot.lane.b32.xlu0 %v5419_v54, %s5008_s19  ;;  %s4980_s19 = scalar_lea.vmem %s4183_s18, 32 }
0x13a4   :  { %p4981_p0 = scmp.ne.s32.totalorder %s4183_s18, %s4980_s19  ;;  %p4986_p2 = scmp.lt.s32.totalorder %s4980_s19, %s4980_s19 }
0x13a6   :  { %p4987_p3 = por %p4986_p2, %p4985_p1 }
0x13a8   :  { %p4988_p4 = pnand %p4987_p3, %p4981_p0 }
0x1412   :  { %v2336_v16 = vpop.xlane.xlu1 %2335 }
0x1413   :  { %4944 = vrcp.f32 %v2336_v16 }
0x1416   :  { %v2339_v21 = vpop.xlane.xlu0 %2338  ;;  %v2499_v30 = vpop.permute.xlu1 %2498 }
0x1417   :  { %4946 = vrcp.f32 %v2339_v21 }
0x141a   :  { %v2421_v26 = vpop.permute.xlu0 %2420  ;;  %v2497_v32 = vpop.permute.xlu1 %2496 }
0x141d   :  { %v4945_v22 = vpop.eup %4944 }
0x141e   :  { %v2342_v23 = vmul.f32 %v4945_v22, %v4941_v11  ;;  %v2577_v33 = vpop.permute.xlu0 %2576  ;;  %v2575_v34 = vpop.permute.xlu1 %2574 }
0x1420   :  { %4627 = vmatmul.mubr.msk.f32.vlgmr.msra.gmra.mrb[32].mxu1 %vm148_vm2, %v2342_v23  ;;  %v4234_v23 = vld [vmem:[%s5717_s3 + $0x28] sm:$0xff] }
0x1421   :  { %v4947_v28 = vpop.eup %4946  ;;  %4630 = vmatpush3.msra.mxu1 %v2421_v26  ;;  %4631 = vmatprep.mubr.msk.f32.mxu1 %vm5005_vm1, %v5004_v18  ;;  %v4233_v26 = vld [vmem:[%s5717_s3 + $0x20] sm:$0xff] }
0x1422   :  { %v2343_v31 = vmul.f32 %v4947_v28, %v4943_v13  ;;  %4634 = vmatprep.subr.mxu1 %v5004_v18  ;;  %v2991_v53 = vpop.permute.xlu1 %2990 }
0x1424   :  { %4632 = vmatmul.mubr.msk.f32.vlgmr.msra.gmra.mrb[34].mxu1 %vm148_vm2, %v2343_v31 }
0x1425   :  { %4636 = vmatprep.mubr.msk.f32.mxu1 %vm5005_vm1, %v5004_v18 }
0x1428   :  { %4635 = vmatpush3.xpose.msk.msra.mxu1 %vm148_vm2, %v2499_v30 }
0x1429   :  { %4639 = vmatprep.subr.mxu1 %v5004_v18 }
0x142b   :  { %4637 = vmatmul.mubr.msk.f32.vlgmr.msra.gmra.mrb[36].mxu1 %vm148_vm2, %v2497_v32 }
0x142c   :  { %4640 = vmatpush3.xpose.msk.msra.mxu1 %vm148_vm2, %v2577_v33  ;;  %4641 = vmatprep.mubr.msk.f32.mxu1 %vm5005_vm1, %v5004_v18 }
0x142d   :  { %4649 = vmatprep.subr.mxu1 %v5004_v18 }
0x142f   :  { %4642 = vmatmul.mubr.msk.f32.vlgmr.msra.gmra.mrb[38].mxu1 %vm148_vm2, %v2575_v34 }
0x1430   :  { %4651 = vmatprep.mubr.msk.f32.mxu1 %vm5005_vm1, %v5004_v18 }
0x14f3   :  { %v5481_v35 = vpop.f32.mrb[32].mxu1 }
0x14f4   :  { %v4628_v36 = vpop.f32.mrb[33].mxu1 }
0x14f7   :  { %v5483_v37 = vpop.f32.mrb[34].mxu1 }
0x14f8   :  { %v4633_v38 = vpop.f32.mrb[35].mxu1 }
0x14fe   :  { %v2570_v39 = vpop.f32.mrb[36].mxu1 }
0x14ff   :  { %v4638_v40 = vpop.f32.mrb[37].mxu1  ;;  %v2652_v20 = vsel %vm148_vm2, %v2570_v39, -inf }
0x1502   :  { %v2648_v41 = vpop.f32.mrb[38].mxu1 }
0x1503   :  { %v4643_v43 = vpop.f32.mrb[39].mxu1  ;;  %v2655_v27 = vsel %vm148_vm2, %v2648_v41, -inf }
0x1504   :  { %2656 = vmax.xlane.f32.xlu0 %v2655_v27 }
0x151a   :  { %2750 = vrot.lane.b32.xlu0 %v5419_v54, %s5011_s22 }
0x151e   :  { %2988 = vrot.lane.b32.xlu0 %v5429_v60, %s5012_s23 }
0x1522   :  { %3066 = vrot.lane.b32.xlu0 %v5438_v61, %s5012_s23 }
0x1591   :  { %v2657_v45 = vpop.xlane.xlu0 %2656 }
0x1592   :  { %v2659_v46 = vsub.f32 %v2648_v41, %v2657_v45  ;;  %v4235_v45 = vld [vmem:[%s5717_s3 + $0x30] sm:$0xff] }
0x1594   :  { %v2662_v47 = vmul.f32 1.442695, %v2659_v46 }
0x1595   :  { %v2751_v48 = vpop.permute.xlu0 %2750 }
0x1596   :  { %4948 = vpow2.f32 %v2662_v47  ;;  %4650 = vmatpush3.msra.mxu1 %v2751_v48 }
0x1597   :  { %4664 = vmatprep.subr.mxu1 %v5004_v18 }
0x1599   :  { %v2989_v29 = vpop.permute.xlu0 %2988 }
0x159d   :  { %v3067_v0 = vpop.permute.xlu0 %3066 }
0x15a0   :  { %v4949_v25 = vpop.eup %4948 }
0x15a1   :  { %v2667_v49 = vsel %vm148_vm2, %v4949_v25, 0.0 }
0x15a2   :  { %2668 = vadd.xlane.f32.xlu1 %v2667_v49 }
0x15b3   :  { %3068 = vrot.lane.b32.xlu1 %v5419_v54, %s5010_s21 }
0x15d7   :  { %2653 = vmax.xlane.f32.xlu1 %v2652_v20 }
0x162f   :  { %v2669_v55 = vpop.xlane.xlu1 %2668 }
0x1630   :  { %4950 = vrcp.f32 %v2669_v55 }
0x1633   :  { %v3069_v63 = vpop.permute.xlu1 %3068 }
0x163a   :  { %v4951_v59 = vpop.eup %4950 }
0x163b   :  { %v2673_v19 = vmul.f32 %v4951_v59, %v4949_v25 }
0x163d   :  { %4652 = vmatmul.mubr.msk.f32.vlgmr.msra.gmra.mrb[40].mxu1 %vm148_vm2, %v2673_v19 }
0x163e   :  { %4665 = vmatpush3.xpose.msk.msra.mxu1 %vm148_vm2, %v2991_v53  ;;  %4666 = vmatprep.mubr.msk.f32.mxu1 %vm5005_vm1, %v5004_v18 }
0x163f   :  { %4669 = vmatprep.subr.mxu1 %v5004_v18 }
0x1641   :  { %4667 = vmatmul.mubr.msk.f32.vlgmr.msra.gmra.mrb[42].mxu1 %vm148_vm2, %v2989_v29 }
0x1642   :  { %4670 = vmatpush3.xpose.msk.msra.mxu1 %vm148_vm2, %v3069_v63  ;;  %4671 = vmatprep.mubr.msk.f32.mxu1 %vm5005_vm1, %v5004_v18 }
0x1643   :  { %4679 = vmatprep.subr.mxu1 %v5004_v18 }
0x1645   :  { %4672 = vmatmul.mubr.msk.f32.vlgmr.msra.gmra.mrb[44].mxu1 %vm148_vm2, %v3067_v0 }
0x1646   :  { %4681 = vmatprep.mubr.msk.f32.mxu1 %vm5005_vm1, %v5004_v18 }
0x1664   :  { %v2654_v1 = vpop.xlane.xlu1 %2653 }
0x1665   :  { %v2658_v17 = vsub.f32 %v2570_v39, %v2654_v1 }
0x1667   :  { %v2660_v58 = vmul.f32 1.442695, %v2658_v17 }
0x1669   :  { %4952 = vpow2.f32 %v2660_v58 }
0x1673   :  { %v4953_v2 = vpop.eup %4952 }
0x1674   :  { %v2664_v62 = vsel %vm148_vm2, %v4953_v2, 0.0 }
0x1675   :  { %2665 = vadd.xlane.f32.xlu0 %v2664_v62 }
0x168b   :  { %2674 = vrot.lane.b32.xlu0 %v5421_v56, %s5011_s22 }
0x168f   :  { %3242 = vrot.lane.b32.xlu0 %v5419_v54, %s5013_s24 }
0x1693   :  { %3403 = vrot.lane.b32.xlu0 %v5421_v56, %s5014_s25 }
0x1697   :  { %3481 = vrot.lane.b32.xlu0 %v5419_v54, %s5014_s25 }
0x169b   :  { %3401 = vrot.lane.b32.xlu0 %v5429_v60, %s5015_s26 }
0x1702   :  { %v2666_v4 = vpop.xlane.xlu0 %2665 }
0x1703   :  { %4954 = vrcp.f32 %v2666_v4 }
0x1706   :  { %v2675_v5 = vpop.permute.xlu0 %2674 }
0x1707   :  { %4645 = vmatpush3.msra.mxu0 %v2675_v5 }
0x1708   :  { %4654 = vmatprep.subr.mxu0 %v4234_v23 }
0x170a   :  { %v3243_v6 = vpop.permute.xlu0 %3242 }
0x170b   :  { %4680 = vmatpush3.msra.mxu1 %v3243_v6 }
0x170c   :  { %4689 = vmatprep.subr.mxu1 %v5004_v18 }
0x170d   :  { %v4955_v7 = vpop.eup %4954 }
0x170e   :  { %v2672_v8 = vmul.f32 %v4955_v7, %v4953_v2  ;;  %v3404_v47 = vpop.permute.xlu0 %3403 }
0x1710   :  { %4647 = vmatmul.mubr.msk.f32.vlgmr.msra.gmra.mrb[14].mxu0 %vm148_vm2, %v2672_v8  ;;  %v2822_v11 = vpop.f32.mrb[40].mxu1 }
0x1711   :  { %v4653_v12 = vpop.f32.mrb[41].mxu1  ;;  %4655 = vmatpush3.msra.mxu0 %v4234_v23  ;;  %v4236_v23 = vld [vmem:[%s5717_s3 + $0x38] sm:$0xff] }
0x1712   :  { %4659 = vmatprep.subr.mxu0 %v4233_v26  ;;  %v3482_v25 = vpop.permute.xlu0 %3481 }
0x1714   :  { %v3062_v13 = vpop.f32.mrb[42].mxu1 }
0x1715   :  { %v4668_v14 = vpop.f32.mrb[43].mxu1  ;;  %v3144_v16 = vsel %vm148_vm2, %v3062_v13, -inf }
0x1716   :  { %3145 = vmax.xlane.f32.xlu1 %v3144_v16  ;;  %v3402_v20 = vpop.permute.xlu0 %3401 }
0x1718   :  { %v3140_v60 = vpop.f32.mrb[44].mxu1 }
0x1719   :  { %v4673_v21 = vpop.f32.mrb[45].mxu1  ;;  %v3147_v22 = vsel %vm148_vm2, %v3140_v60, -inf }
0x171a   :  { %3148 = vmax.xlane.f32.xlu1 %v3147_v22 }
0x17a3   :  { %v3146_v28 = vpop.xlane.xlu1 %3145 }
0x17a4   :  { %v3150_v30 = vsub.f32 %v3062_v13, %v3146_v28 }
0x17a6   :  { %v3152_v31 = vmul.f32 1.442695, %v3150_v30 }
0x17a7   :  { %v3149_v32 = vpop.xlane.xlu1 %3148 }
0x17a8   :  { %4956 = vpow2.f32 %v3152_v31  ;;  %v3151_v33 = vsub.f32 %v3140_v60, %v3149_v32 }
0x17aa   :  { %v3154_v34 = vmul.f32 1.442695, %v3151_v33 }
0x17ac   :  { %4958 = vpow2.f32 %v3154_v34  ;;  %v3817_v34 = vrot.slane %v5414_v52, %v5082_v9 }
0x17b2   :  { %v4957_v36 = vpop.eup %4956 }
0x17b3   :  { %v3156_v38 = vsel %vm148_vm2, %v4957_v36, 0.0 }
0x17b4   :  { %3157 = vadd.xlane.f32.xlu1 %v3156_v38 }
0x17b6   :  { %v4959_v39 = vpop.eup %4958 }
0x17b7   :  { %v3159_v40 = vsel %vm148_vm2, %v4959_v39, 0.0 }
0x17b8   :  { %3160 = vadd.xlane.f32.xlu1 %v3159_v40 }
0x17c9   :  { %3166 = vrot.lane.b32.xlu1 %v5421_v56, %s5013_s24 }
0x17cd   :  { %3479 = vrot.lane.b32.xlu1 %v5438_v61, %s5015_s26 }
0x17e3   :  { %v2746_v41 = vpop.f32.mrb[14].mxu0 }
0x17e4   :  { %v4648_v43 = vpop.f32.mrb[15].mxu0  ;;  %4656 = vmatprep.mubr.msk.f32.mxu0 %vm148_vm2, %v2746_v41 }
0x17e5   :  { %4657 = vmatmul.mubr.msk.f32.vlgmr.msra.gmra.mrb[16].mxu0 %vm148_vm2, %v2822_v11 }
0x17e6   :  { %4661 = vmatprep.mubr.msk.f32.mxu0 %vm148_vm2, %v5481_v35  ;;  %4660 = vmatpush3.msra.mxu0 %v4233_v26 }
0x17e7   :  { %4674 = vmatprep.subr.mxu0 %v5004_v18 }
0x17ed   :  { %4662 = vmatmul.mubr.msk.f32.vlgmr.msra.gmra.mrb[16].mxu0 %vm148_vm2, %v5483_v37 }
0x17ee   :  { %4676 = vmatprep.mubr.msk.f32.mxu0 %vm5005_vm1, %v5004_v18 }
0x1841   :  { %v3158_v27 = vpop.xlane.xlu1 %3157 }
0x1842   :  { %4960 = vrcp.f32 %v3158_v27 }
0x1845   :  { %v3161_v61 = vpop.xlane.xlu1 %3160 }
0x1846   :  { %4962 = vrcp.f32 %v3161_v61 }
0x1849   :  { %v3167_v46 = vpop.permute.xlu1 %3166 }
0x184a   :  { %4675 = vmatpush3.msra.mxu0 %v3167_v46 }
0x184b   :  { %4684 = vmatprep.subr.mxu0 %v4235_v45 }
0x184c   :  { %v4961_v35 = vpop.eup %4960 }
0x184d   :  { %v3164_v48 = vmul.f32 %v4961_v35, %v4957_v36  ;;  %v3480_v29 = vpop.permute.xlu1 %3479 }
0x184f   :  { %4677 = vmatmul.mubr.msk.f32.vlgmr.msra.gmra.mrb[18].mxu0 %vm148_vm2, %v3164_v48 }
0x1850   :  { %v4963_v37 = vpop.eup %4962  ;;  %4685 = vmatpush3.msra.mxu0 %v4235_v45 }
0x1851   :  { %v3165_v49 = vmul.f32 %v4963_v37, %v4959_v39  ;;  %4694 = vmatprep.subr.mxu0 %v5004_v18 }
0x1853   :  { %4682 = vmatmul.mubr.msk.f32.vlgmr.msra.gmra.mrb[46].mxu1 %vm148_vm2, %v3165_v49  ;;  %v4269_v49 = vld [vmem:[%s5718_s4 + $0x20] sm:$0xff] }
0x1854   :  { %4690 = vmatpush3.xpose.msk.msra.mxu1 %vm148_vm2, %v3404_v47  ;;  %4691 = vmatprep.mubr.msk.f32.mxu1 %vm5005_vm1, %v5004_v18 }
0x1855   :  { %4699 = vmatprep.subr.mxu1 %v5004_v18 }
0x1857   :  { %4692 = vmatmul.mubr.msk.f32.vlgmr.msra.gmra.mrb[48].mxu1 %vm148_vm2, %v3402_v20  ;;  %v4270_v20 = vld [vmem:[%s5718_s4 + $0x28] sm:$0xff] }
0x1858   :  { %4701 = vmatprep.mubr.msk.f32.mxu1 %vm5005_vm1, %v5004_v18 }
0x1922   :  { %v3238_v53 = vpop.f32.mrb[18].mxu0 }
0x1923   :  { %v4678_v55 = vpop.f32.mrb[19].mxu0  ;;  %4686 = vmatprep.mubr.msk.f32.mxu0 %vm148_vm2, %v3238_v53  ;;  %v4827_v53 = vpack.c.bf16 %v4270_v20, %v4269_v49 }
0x1924   :  { %v4271_v55 = vld [vmem:[%s5718_s4 + $0x30] sm:$0xff] }
0x1926   :  { %v3314_v59 = vpop.f32.mrb[46].mxu1 }
0x1927   :  { %v4683_v19 = vpop.f32.mrb[47].mxu1  ;;  %4687 = vmatmul.mubr.msk.f32.vlgmr.msra.gmra.mrb[16].mxu0 %vm148_vm2, %v3314_v59  ;;  %v4272_v59 = vld [vmem:[%s5718_s4 + $0x38] sm:$0xff] }
0x1928   :  { %4695 = vmatpush3.xpose.msk.msra.mxu0 %vm148_vm2, %v3482_v25  ;;  %4696 = vmatprep.mubr.msk.f32.mxu0 %vm5005_vm1, %v5004_v18  ;;  %v4831_v19 = vpack.c.bf16 %v4272_v59, %v4271_v55 }
0x1929   :  { %4704 = vmatprep.subr.mxu0 %v5004_v18 }
0x192a   :  { %v3475_v63 = vpop.f32.mrb[48].mxu1 }
0x192b   :  { %v4693_v0 = vpop.f32.mrb[49].mxu1  ;;  %4697 = vmatmul.mubr.msk.f32.vlgmr.msra.gmra.mrb[20].mxu0 %vm148_vm2, %v3480_v29  ;;  %v3557_v1 = vsel %vm148_vm2, %v3475_v63, -inf  ;;  %v4275_v29 = vld [vmem:[%s5719_s5 + $0x80] sm:$0xff] }
0x192c   :  { %3558 = vmax.xlane.f32.xlu0 %v3557_v1  ;;  %4706 = vmatprep.mubr.msk.f32.mxu0 %vm5005_vm1, %v5004_v18  ;;  %v4277_v0 = vld [vmem:[%s5719_s5 + $0x90] sm:$0xff] }
0x19b9   :  { %v3559_v17 = vpop.xlane.xlu0 %3558 }
0x19ba   :  { %v3563_v58 = vsub.f32 %v3475_v63, %v3559_v17  ;;  %v4276_v63 = vld [vmem:[%s5719_s5 + $0x88] sm:$0xff]  ;;  %v4278_v17 = vld [vmem:[%s5719_s5 + $0x98] sm:$0xff] }
0x19bb   :  { %v4835_v1 = vpack.c.bf16 %v4276_v63, %v4275_v29 }
0x19bc   :  { %v3565_v2 = vmul.f32 1.442695, %v3563_v58  ;;  %v4839_v58 = vpack.c.bf16 %v4278_v17, %v4277_v0 }
0x19be   :  { %4964 = vpow2.f32 %v3565_v2  ;;  %v4279_v2 = vld [vmem:[%s5719_s5 + $0xa0] sm:$0xff] }
0x19c8   :  { %v4965_v62 = vpop.eup %4964 }
0x19c9   :  { %v3569_v4 = vsel %vm148_vm2, %v4965_v62, 0.0 }
0x19ca   :  { %3570 = vadd.xlane.f32.xlu0 %v3569_v4 }
0x19fe   :  { %v3553_v5 = vpop.f32.mrb[20].mxu0 }
0x19ff   :  { %v4698_v6 = vpop.f32.mrb[21].mxu0  ;;  %v3560_v7 = vsel %vm148_vm2, %v3553_v5, -inf }
0x1a00   :  { %3561 = vmax.xlane.f32.xlu1 %v3560_v7  ;;  %v4282_v6 = vld [vmem:[%s5719_s5 + $0xb8] sm:$0xff] }
0x1a11   :  { %3579 = vrot.lane.b32.xlu1 %v5421_v56, %s5016_s11 }
0x1a57   :  { %v3571_v8 = vpop.xlane.xlu0 %3570 }
0x1a58   :  { %4966 = vrcp.f32 %v3571_v8  ;;  %v4283_v8 = vld [vmem:[%s5719_s5 + $0xc0] sm:$0xff] }
0x1a62   :  { %v4967_v12 = vpop.eup %4966 }
0x1a63   :  { %v3577_v16 = vmul.f32 %v4967_v12, %v4965_v62  ;;  %v4280_v62 = vld [vmem:[%s5719_s5 + $0xa8] sm:$0xff] }
0x1a64   :  { %v4843_v4 = vpack.c.bf16 %v4280_v62, %v4279_v2  ;;  %v4088_v2 = vld [vmem:[%s5721_s7] sm:$0xff]  ;;  %v4089_v62 = vld [vmem:[%s5721_s7 + $0x8] sm:$0xff] }
0x1a8d   :  { %v3562_v11 = vpop.xlane.xlu1 %3561 }
0x1a8e   :  { %v3564_v13 = vsub.f32 %v3553_v5, %v3562_v11  ;;  %v4281_v5 = vld [vmem:[%s5719_s5 + $0xb0] sm:$0xff]  ;;  %v4284_v11 = vld [vmem:[%s5719_s5 + $0xc8] sm:$0xff] }
0x1a8f   :  { %v4847_v7 = vpack.c.bf16 %v4282_v6, %v4281_v5  ;;  %v4851_v12 = vpack.c.bf16 %v4284_v11, %v4283_v8  ;;  %v5017_v5 = vmov 0.0|0.0   ;;  %v4868_v6 = vpack.c.bf16 %v4089_v62, %v4088_v2 }
0x1a90   :  { %v3567_v14 = vmul.f32 1.442695, %v3564_v13  ;;  %v4285_v13 = vld [vmem:[%s5719_s5 + $0xd0] sm:$0xff] }
0x1a91   :  { %v3580_v60 = vpop.permute.xlu1 %3579 }
0x1a92   :  { %4968 = vpow2.f32 %v3567_v14  ;;  %4700 = vmatpush3.msra.mxu1 %v3580_v60  ;;  %v4286_v14 = vld [vmem:[%s5719_s5 + $0xd8] sm:$0xff]  ;;  %v4287_v60 = vld [vmem:[%s5719_s5 + $0xe0] sm:$0xff] }
0x1a93   :  { %4702 = vmatmul.mubr.msk.f32.vlgmr.msra.gmra.mrb[50].mxu1 %vm148_vm2, %v3577_v16  ;;  %4828 = vmatprep.subr.bf16.mxu1 %v4827_v53  ;;  %v4855_v16 = vpack.c.bf16 %v4286_v14, %v4285_v13 }
0x1a94   :  { %4830 = vmatpush3.bf16.msra.mxu1 %v4827_v53 }
0x1a95   :  { %4832 = vmatprep.subr.bf16.mxu1 %v4831_v19 }
0x1a98   :  { %4834 = vmatpush3.bf16.msra.mxu1 %v4831_v19 }
0x1a99   :  { %4867 = vmatprep.subr.bf16.mxu1 %v5017_v5 }
0x1a9c   :  { %v4969_v21 = vpop.eup %4968 }
0x1a9d   :  { %v3572_v22 = vsel %vm148_vm2, %v4969_v21, 0.0 }
0x1a9e   :  { %3573 = vadd.xlane.f32.xlu0 %v3572_v22 }
0x1ab4   :  { %3655 = vrot.lane.b32.xlu0 %v5419_v54, %s5016_s11 }
0x1b2b   :  { %v3574_v56 = vpop.xlane.xlu0 %3573 }
0x1b2c   :  { %4970 = vrcp.f32 %v3574_v56 }
0x1b2f   :  { %v3656_v26 = vpop.permute.xlu0 %3655 }
0x1b30   :  { %4705 = vmatpush3.msra.mxu0 %v3656_v26 }
0x1b31   :  { %4709 = vmatprep.subr.mxu0 %v4236_v23 }
0x1b36   :  { %v4971_v28 = vpop.eup %4970 }
0x1b37   :  { %v3578_v30 = vmul.f32 %v4971_v28, %v4969_v21  ;;  %v4288_v21 = vld [vmem:[%s5719_s5 + $0xe8] sm:$0xff] }
0x1b38   :  { %v4859_v22 = vpack.c.bf16 %v4288_v21, %v4287_v60  ;;  %v4079_v21 = vrot.slane %v5414_v52, %v2057_v42  ;;  %v4291_v42 = vld [vmem:[%s5721_s7 + $0x20] ss:$0 sm:$0xff] }
0x1b39   :  { %4707 = vmatmul.mubr.msk.f32.vlgmr.msra.gmra.mrb[22].mxu0 %vm148_vm2, %v3578_v30 }
0x1b3a   :  { %4710 = vmatpush3.msra.mxu0 %v4236_v23 }
0x1b3b   :  { %4836 = vmatprep.subr.bf16.mxu0 %v4835_v1 }
0x1b66   :  { %v3651_v31 = vpop.f32.mrb[50].mxu1 }
0x1b67   :  { %v4703_v32 = vpop.f32.mrb[51].mxu1  ;;  %4711 = vmatprep.mubr.msk.f32.mxu0 %vm148_vm2, %v3651_v31 }
0x1b68   :  { %v3851_v32 = vrot.slane %v5414_v52, %v5085_v10  ;;  %v4289_v10 = vld [vmem:[%s5719_s5 + $0xf0] sm:$0xff] }
0x1c0c   :  { %v3727_v33 = vpop.f32.mrb[22].mxu0 }
0x1c0d   :  { %v4708_v54 = vpop.f32.mrb[23].mxu0  ;;  %4712 = vmatmul.mubr.msk.f32.vlgmr.msra.gmra.mrb[16].mxu0 %vm148_vm2, %v3727_v33 }
0x1c0e   :  { %4838 = vmatpush3.bf16.msra.mxu0 %v4835_v1 }
0x1c0f   :  { %4840 = vmatprep.subr.bf16.mxu0 %v4839_v58 }
0x1c12   :  { %4842 = vmatpush3.bf16.msra.mxu0 %v4839_v58 }
0x1c13   :  { %4844 = vmatprep.subr.bf16.mxu0 %v4843_v4 }
0x1c16   :  { %4846 = vmatpush3.bf16.msra.mxu0 %v4843_v4  ;;  %v4090_v4 = vld [vmem:[%s5721_s7 + $0x10] sm:$0xff] }
0x1c17   :  { %4848 = vmatprep.subr.bf16.mxu0 %v4847_v7 }
0x1c1a   :  { %4850 = vmatpush3.bf16.msra.mxu0 %v4847_v7  ;;  %v4091_v7 = vld [vmem:[%s5721_s7 + $0x18] sm:$0xff] }
0x1c1b   :  { %4852 = vmatprep.subr.bf16.mxu0 %v4851_v12  ;;  %v4871_v8 = vpack.c.bf16 %v4091_v7, %v4090_v4 }
0x1c1e   :  { %4854 = vmatpush3.bf16.msra.mxu0 %v4851_v12 }
0x1c1f   :  { %4856 = vmatprep.subr.bf16.mxu0 %v4855_v16 }
0x1c22   :  { %4858 = vmatpush3.bf16.msra.mxu0 %v4855_v16 }
0x1c23   :  { %4860 = vmatprep.subr.bf16.mxu0 %v4859_v22 }
0x1c26   :  { %4862 = vmatpush3.bf16.msra.mxu0 %v4859_v22 }
0x1ce0   :  { %v4713_v36 = vpop.f32.mrb[16].mxu0 }
0x1ce1   :  { %v3819_v38 = vadd.f32 %v4713_v36, %v3817_v34  ;;  %v3803_v39 = vpop.f32.mrb[17].mxu0 }
0x1ce2   :  { %v3818_v40 = vadd.f32 %v3817_v34, %v3803_v39 }
0x1ce3   :  { %v3821_v41 = vadd.f32 %v3819_v38, %v5403_v51  ;;  %v3857_v38 = vrot.slane %v5414_v52, %v1837_v44 }
0x1ce4   :  { %v3820_v43 = vadd.f32 %v3818_v40, %v5401_v50 }
0x1ce5   :  { %v3825_v27 = vsel %vm57_vm0, %v3821_v41, 0.0 }
0x1ce6   :  { %3826 = vadd.xlane.f32.xlu0 %v3825_v27  ;;  %v3822_v61 = vsel %vm57_vm0, %v3820_v43, 0.0  ;;  %v4290_v27 = vld [vmem:[%s5719_s5 + $0xf8] sm:$0xff] }
0x1ce7   :  { %3823 = vadd.xlane.f32.xlu1 %v3822_v61  ;;  %v4863_v44 = vpack.c.bf16 %v4290_v27, %v4289_v10  ;;  %v3868_v61 = vrot.slane %v5414_v52, %v1847_v57 }
0x1ce9   :  { %4864 = vmatprep.subr.bf16.mxu0 %v4863_v44 }
0x1cea   :  { %4866 = vmatpush3.bf16.msra.mxu0 %v4863_v44 }
0x1d73   :  { %v3827_v45 = vpop.xlane.xlu0 %3826 }
0x1d74   :  { %v3829_v46 = vmul.f32 0.03125, %v3827_v45  ;;  %v3824_v47 = vpop.xlane.xlu1 %3823 }
0x1d75   :  { %v3828_v35 = vmul.f32 0.03125, %v3824_v47 }
0x1d76   :  { %v5589_v48 = vsub.f32 %v3821_v41, %v3829_v46 }
0x1d77   :  { %v5591_v9 = vsub.f32 %v3820_v43, %v3828_v35 }
0x1d78   :  { %v3833_v37 = vmul.f32 %v5589_v48, %v5589_v48 }
0x1d79   :  { %v3832_v50 = vmul.f32 %v5591_v9, %v5591_v9 }
0x1d7a   :  { %v3837_v51 = vsel %vm57_vm0, %v3833_v37, 0.0 }
0x1d7b   :  { %3838 = vadd.xlane.f32.xlu0 %v3837_v51  ;;  %v3834_v25 = vsel %vm57_vm0, %v3832_v50, 0.0 }
0x1d7c   :  { %3835 = vadd.xlane.f32.xlu1 %v3834_v25 }
0x1e08   :  { %v3839_v56 = vpop.xlane.xlu0 %3838 }
0x1e09   :  { %v3841_v23 = vmul.f32 0.03125, %v3839_v56  ;;  %v3836_v26 = vpop.xlane.xlu1 %3835 }
0x1e0a   :  { %v3840_v28 = vmul.f32 0.03125, %v3836_v26  ;;  %v4085_v26 = vrot.slane %v5414_v52, %v2063_v24 }
0x1e0b   :  { %v3843_v30 = vadd.f32 1e-05, %v3841_v23 }
0x1e0c   :  { %v3842_v31 = vadd.f32 1e-05, %v3840_v28 }
0x1e0d   :  { %4972 = vrsqrt.f32 %v3843_v30 }
0x1e0e   :  { %4974 = vrsqrt.f32 %v3842_v31 }
0x1e17   :  { %v4973_v33 = vpop.eup %4972 }
0x1e18   :  { %v4975_v54 = vpop.eup %4974  ;;  %v3847_v34 = vmul.f32 %v4973_v33, %v5589_v48 }
0x1e19   :  { %v3846_v36 = vmul.f32 %v4975_v54, %v5591_v9  ;;  %v3972_v9 = vrot.slane %v5414_v52, %v1950_v15 }
0x1e1a   :  { %v3853_v39 = vmul.f32 %v3851_v32, %v3847_v34 }
0x1e1b   :  { %v3852_v40 = vmul.f32 %v3851_v32, %v3846_v36 }
0x1e1c   :  { %v3859_v43 = vadd.f32 %v3857_v38, %v3853_v39 }
0x1e1d   :  { %v3858_v41 = vadd.f32 %v3857_v38, %v3852_v40 }
0x1e1f   :  { %4722 = vmatprep.mubr.msk.f32.mxu1 %vm57_vm0, %v3858_v41 }
0x1e20   :  { %4723 = vmatmul.mubr.msk.f32.vlgmr.msra.gmra.mrb[52].mxu1 %vm57_vm0, %v3859_v43 }
0x1e21   :  { %4768 = vmatprep.mubr.msk.f32.mxu1 %vm5005_vm1, %v5004_v18  ;;  %4869 = vmatpush3.bf16.msra.mxu1 %v4868_v6 }
0x1e22   :  { %4870 = vmatprep.subr.bf16.mxu1 %v5017_v5 }
0x1e25   :  { %4872 = vmatpush3.bf16.msra.mxu1 %v4871_v8 }
0x1ef3   :  { %v4724_v45 = vpop.f32.mrb[52].mxu1 }
0x1ef4   :  { %v3947_v46 = vadd.f32 %v4724_v45, %v3868_v61  ;;  %v3941_v47 = vpop.f32.mrb[53].mxu1 }
0x1ef5   :  { %v3942_v35 = vadd.f32 %v3941_v47, %v3868_v61 }
0x1ef6   :  { %v3951_v48 = vmax.f32 %v3947_v46, 0.0 }
0x1ef7   :  { %v3950_v18 = vmax.f32 %v3942_v35, 0.0 }
0x1ef9   :  { %4757 = vmatprep.mubr.f32.mxu0 %v3950_v18 }
0x1efa   :  { %4758 = vmatmul.mubr.f32.vlgmr.msra.gmra.mrb[24].mxu0 %v3951_v48 }
0x1fcd   :  { %v4759_v37 = vpop.f32.mrb[24].mxu0 }
0x1fce   :  { %v4045_v50 = vadd.f32 %v4759_v37, %v3972_v9  ;;  %v4039_v51 = vpop.f32.mrb[25].mxu0 }
0x1fcf   :  { %v4040_v25 = vadd.f32 %v4039_v51, %v3972_v9 }
0x1fd0   :  { %v4049_v49 = vadd.f32 %v4045_v50, %v3859_v43 }
0x1fd1   :  { %v4048_v20 = vadd.f32 %v4040_v25, %v3858_v41 }
0x1fd2   :  { %v4053_v57 = vsel %vm57_vm0, %v4049_v49, 0.0 }
0x1fd3   :  { %4054 = vadd.xlane.f32.xlu0 %v4053_v57  ;;  %v4050_v53 = vsel %vm57_vm0, %v4048_v20, 0.0 }
0x1fd4   :  { %4051 = vadd.xlane.f32.xlu1 %v4050_v53 }
0x2060   :  { %v4055_v55 = vpop.xlane.xlu0 %4054 }
0x2061   :  { %v4057_v59 = vmul.f32 0.03125, %v4055_v55  ;;  %v4052_v19 = vpop.xlane.xlu1 %4051 }
0x2062   :  { %v4056_v29 = vmul.f32 0.03125, %v4052_v19 }
0x2063   :  { %v4059_v63 = vsub.f32 %v4049_v49, %v4057_v59 }
0x2064   :  { %v4058_v0 = vsub.f32 %v4048_v20, %v4056_v29 }
0x2065   :  { %v4061_v1 = vmul.f32 %v4059_v63, %v4059_v63 }
0x2066   :  { %v4060_v15 = vmul.f32 %v4058_v0, %v4058_v0 }
0x2067   :  { %v4065_v17 = vsel %vm57_vm0, %v4061_v1, 0.0 }
0x2068   :  { %4066 = vadd.xlane.f32.xlu0 %v4065_v17  ;;  %v4062_v58 = vsel %vm57_vm0, %v4060_v15, 0.0 }
0x2069   :  { %4063 = vadd.xlane.f32.xlu1 %v4062_v58 }
0x20f5   :  { %v4067_v11 = vpop.xlane.xlu0 %4066 }
0x20f6   :  { %v4069_v12 = vmul.f32 0.03125, %v4067_v11  ;;  %v4064_v13 = vpop.xlane.xlu1 %4063 }
0x20f7   :  { %v4068_v14 = vmul.f32 0.03125, %v4064_v13 }
0x20f8   :  { %v4071_v16 = vadd.f32 1e-05, %v4069_v12 }
0x20f9   :  { %v4070_v60 = vadd.f32 1e-05, %v4068_v14 }
0x20fa   :  { %4976 = vrsqrt.f32 %v4071_v16 }
0x20fb   :  { %4978 = vrsqrt.f32 %v4070_v60 }
0x2104   :  { %v4977_v22 = vpop.eup %4976 }
0x2105   :  { %v4979_v56 = vpop.eup %4978  ;;  %v4075_v23 = vmul.f32 %v4977_v22, %v4059_v63 }
0x2106   :  { %v4074_v28 = vmul.f32 %v4979_v56, %v4058_v0 }
0x2107   :  { %v4081_v30 = vmul.f32 %v4079_v21, %v4075_v23 }
0x2108   :  { %v4080_v31 = vmul.f32 %v4079_v21, %v4074_v28 }
0x2109   :  { %v4087_v32 = vadd.f32 %v4085_v26, %v4081_v30 }
0x210a   :  { %v4086_v33 = vadd.f32 %v4085_v26, %v4080_v31 }
0x210b   :  { %v4100_v54 = vrot.slane %v4087_v32, 6 }
0x210c   :  { %v4099_v34 = vrot.slane %v4086_v33, 7 }
0x210e   :  { %v4102_v36 = vsel %vm4101_vm3, %v4100_v54, %v4099_v34 }
0x210f   :  { %4769 = vmatmul.mubr.msk.f32.vlgmr.msra.gmra.mrb[54].mxu1 %vm57_vm0, %v4102_v36 }
0x21e2   :  { %v4171_v3 = vpop.f32.mrb[54].mxu1 }
0x21e3   :  { %v4172_v38 = vadd.f32 %v4291_v42, %v4171_v3  ;;  %v4770_v24 = vpop.f32.mrb[55].mxu1 }
0x21e5   :  { %4175 = vst [vmem:[#allocation2] sm:$0x3] %v4172_v38 }
0x21e6   :  { %4991 = shalt.err (!%p4988_p4)
}
0x21e7   :  { %s4992_s22 = scalar_lea.hbm %s5722_s8, 32 }
0x21e8   :  { %p4993_p5 = scmp.ne.s32.totalorder %s5722_s8, %s4992_s22  ;;  %p4996_p6 = scmp.lt.u32.totalorder %s4992_s22, %s5722_s8 }
0x21ea   :  { %p4998_p7 = pnand %p4996_p6, %p4993_p5 }
0x21ec   :  { %5001 = shalt.err (!%p4998_p7)
}
0x21ed   :  { %4185 = dma.vmem_to_hbm [thread:$0]  %s4183_s18, 32, %s5722_s8, [#allocation3]  }
0x21ee   :  { %5002 = dma.done.wait [#allocation3], 32  }
0x21ef   :  { %5003 = vsyncadd [#allocation3], 4294967264 }
0x21f0   :  { %4189 = vsyncpa [#allocation3], 1 }

</bundles_post_ra>
